<compile_context>
chip_gen: v7x
topology: tpu7x:2x2x1
jax: 0.10.0
libtpu: 0.0.40
codegen_flags: <defaults>
</compile_context>

<pallas_src>
import functools
import math

import jax
import jax.numpy as jnp
from jax.experimental import pallas as pl
from jax.experimental.pallas import tpu as pltpu


FEAT = 64              # hidden feature channels
NUM_MID = 18           # number of Conv_ReLU_Block layers
NUM_LAYERS = NUM_MID + 2
COMPUTE_DTYPE = jnp.bfloat16   # MXU operand dtype (accumulation stays f32)


def _vdsr_fused_kernel(x_ref, w_ref, b_ref, o_ref, buf_ref, *, H, W, feat, num_layers):
    """One grid step == one 3x3 SAME conv applied to the VMEM-resident activation.

    x_ref:   (1, H, W, feat)    f32  input image embedded in channel 0 (rest zero)
    w_ref:   (1, 9*feat, feat)  bf16 flattened 3x3 weights of the current layer
    b_ref:   (1, 1, feat)       f32  bias of the current layer
    o_ref:   (1, H, W)          f32  final output (written on the last layer only)
    buf_ref: (H+2, W+2, feat)   f32  zero-halo padded activation (persistent scratch)
    """
    l = pl.program_id(1)

    # First layer for this image: zero the halo once and load the image into
    # the interior of the activation buffer.
    @pl.when(l == 0)
    def _init():
        buf_ref[...] = jnp.zeros_like(buf_ref)
        buf_ref[1:H + 1, 1:W + 1, :] = x_ref[0].astype(buf_ref.dtype)

    # Load the padded activation once; cast to bf16 for the MXU.
    src = buf_ref[...].astype(COMPUTE_DTYPE)            # (H+2, W+2, feat)

    # im2col: concatenate the 9 shifted (H, W, feat) windows along channels so
    # the whole 3x3 conv becomes a single K = 9*feat contraction.
    cols = []
    for kh in range(3):
        for kw in range(3):
            cols.append(src[kh:kh + H, kw:kw + W, :])
    patch = jnp.concatenate(cols, axis=-1)               # (H, W, 9*feat) bf16

    acc = jax.lax.dot_general(
        patch, w_ref[0],
        dimension_numbers=(((2,), (0,)), ((), ())),
        preferred_element_type=jnp.float32,
    )                                                    # (H, W, feat) f32
    acc = acc + b_ref[0, 0][None, None, :]

    is_last = l == num_layers - 1

    @pl.when(jnp.logical_not(is_last))
    def _store_hidden():
        # ReLU in f32, write the next activation back in place; halo stays zero.
        buf_ref[1:H + 1, 1:W + 1, :] = jnp.maximum(acc, 0.0).astype(buf_ref.dtype)

    @pl.when(is_last)
    def _store_output():
        # The output conv's weights/bias were zero-padded to 64 output channels,
        # so channels 1..63 of `acc` are exactly zero and a lane reduction
        # recovers channel 0.  Residual add is fused here, in f32.
        y = jnp.sum(acc, axis=-1)                        # (H, W)
        residual = jnp.sum(x_ref[0], axis=-1)            # (H, W); exact (other channels are 0)
        o_ref[0] = (y + residual).astype(o_ref.dtype)


def vdsr_forward(x_nchw, w_stacked, b_stacked):
    """VDSR forward.  x_nchw: (N, 1, H, W).  Returns (N, 1, H, W)."""
    N, C, H, W = x_nchw.shape
    assert C == 1, "VDSR expects a single input channel"
    L = w_stacked.shape[0]

    # Embed the 1-channel image into channel 0 of a FEAT-wide NHWC tensor once;
    # every layer (including the first) is then a uniform feat->feat conv.
    x_nhwc = jnp.transpose(x_nchw, (0, 2, 3, 1))                       # (N, H, W, 1)
    x_emb = jnp.pad(x_nhwc, ((0, 0), (0, 0), (0, 0), (0, FEAT - 1)))    # (N, H, W, FEAT)

    kernel = functools.partial(_vdsr_fused_kernel, H=H, W=W, feat=FEAT, num_layers=L)
    out = pl.pallas_call(
        kernel,
        out_shape=jax.ShapeDtypeStruct((N, H, W), x_nchw.dtype),
        grid=(N, L),
        in_specs=[
            pl.BlockSpec((1, H, W, FEAT), lambda n, l: (n, 0, 0, 0)),      # image (resident over l)
            pl.BlockSpec((1, 9 * FEAT, FEAT), lambda n, l: (l, 0, 0)),     # per-layer weights
            pl.BlockSpec((1, 1, FEAT), lambda n, l: (l, 0, 0)),            # per-layer bias
        ],
        out_specs=pl.BlockSpec((1, H, W), lambda n, l: (n, 0, 0)),
        scratch_shapes=[pltpu.VMEM((H + 2, W + 2, FEAT), jnp.float32)],
        compiler_params=pltpu.CompilerParams(
            dimension_semantics=("parallel", "arbitrary")),
    )(x_emb, w_stacked, b_stacked)
    return out[:, None, :, :]                                            # -> NCHW


def init_vdsr_params(key, num_blocks=NUM_MID, feat=FEAT, dtype=jnp.float32):
    """Per-layer params matching the PyTorch module's shapes / init scheme.

    Weight layout is (kh, kw, cin, cout); weights ~ N(0, sqrt(2/(3*3*cout)))
    like the PyTorch __init__, biases zero.
    """
    def conv_w(k, cin, cout):
        std = math.sqrt(2.0 / (3 * 3 * cout))
        return (jax.random.normal(k, (3, 3, cin, cout), jnp.float32) * std).astype(dtype)

    keys = jax.random.split(key, num_blocks + 2)
    return {
        "w_in": conv_w(keys[0], 1, feat),
        "b_in": jnp.zeros((feat,), dtype),
        "ws": [conv_w(keys[1 + i], feat, feat) for i in range(num_blocks)],
        "bs": [jnp.zeros((feat,), dtype) for _ in range(num_blocks)],
        "w_out": conv_w(keys[num_blocks + 1], feat, 1),
        "b_out": jnp.zeros((1,), dtype),
    }


def fuse_vdsr_params(params, compute_dtype=COMPUTE_DTYPE):
    """Stack all 20 layers into (L, 9*FEAT, FEAT) bf16 weights + (L, 1, FEAT) f32 biases.

    The Cin=1 first conv and Cout=1 last conv are zero-padded to the uniform
    64-channel form so the fused kernel treats every layer identically.
    """
    feat = FEAT
    w_in = jnp.pad(params["w_in"], ((0, 0), (0, 0), (0, feat - 1), (0, 0)))    # (3,3,feat,feat)
    w_out = jnp.pad(params["w_out"], ((0, 0), (0, 0), (0, 0), (0, feat - 1)))  # (3,3,feat,feat)
    w_mid = jnp.stack(params["ws"], axis=0)                                    # (18,3,3,feat,feat)
    w_all = jnp.concatenate([w_in[None], w_mid, w_out[None]], axis=0)          # (20,3,3,feat,feat)
    # (kh, kw, cin) flatten order matches the kernel's im2col concat order.
    w_stacked = w_all.reshape(NUM_LAYERS, 9 * feat, feat).astype(compute_dtype)

    b_out = jnp.pad(params["b_out"], (0, feat - 1))                            # (feat,)
    b_all = jnp.concatenate(
        [params["b_in"][None], jnp.stack(params["bs"], axis=0), b_out[None]], axis=0)
    b_stacked = b_all.reshape(NUM_LAYERS, 1, feat).astype(jnp.float32)
    return w_stacked, b_stacked


if __name__ == "__main__":
    key = jax.random.PRNGKey(0)
    k_params, k_x = jax.random.split(key)

    # Small shapes consistent with the module: 1-channel image, batch=2, 16x16.
    x = jax.random.normal(k_x, (2, 1, 16, 16), jnp.float32)
    params = init_vdsr_params(k_params)
    w_stacked, b_stacked = fuse_vdsr_params(params)

    fwd = jax.jit(vdsr_forward)
    y = fwd(x, w_stacked, b_stacked)
    jax.block_until_ready(y)

    assert y.shape == x.shape, (y.shape, x.shape)
    assert y.dtype == x.dtype
    print("KERNEL_OK")
</pallas_src>

<mosaic_0001>
module attributes {stable_mosaic.version = 11 : i64} {
  func.func @_vdsr_fused_kernel(%arg0: i32, %arg1: i32, %arg2: memref<1x16x16x64xf32, #tpu.memory_space<vmem>>, %arg3: memref<1x576x64xbf16, #tpu.memory_space<vmem>>, %arg4: memref<1x1x64xf32, #tpu.memory_space<vmem>>, %arg5: memref<1x16x16xf32, #tpu.memory_space<vmem>>, %arg6: memref<18x18x64xf32, #tpu.memory_space<vmem>>) attributes {dimension_semantics = [#tpu.dimension_semantics<parallel>, #tpu.dimension_semantics<arbitrary>], iteration_bounds = array<i64: 2, 20>, scalar_prefetch = 0 : i64, scratch_operands = 1 : i64, tpu.core_type = #tpu.core_type<tc>, window_params = [{transform_indices = @transform_0, window_bounds = array<i64: 1, 16, 16, 64>}, {transform_indices = @transform_1, window_bounds = array<i64: 1, 576, 64>}, {transform_indices = @transform_2, window_bounds = array<i64: 1, 1, 64>}, {transform_indices = @transform_3, window_bounds = array<i64: 1, 16, 16>}]} {
    %c0_i32 = arith.constant 0 : i32
    %0 = arith.cmpi eq, %arg1, %c0_i32 : i32
    %1 = arith.extui %0 : i1 to i32
    %c0_i32_0 = arith.constant 0 : i32
    %2 = arith.cmpi ne, %1, %c0_i32_0 : i32
    scf.if %2 {
      %cst_11 = arith.constant 0.000000e+00 : f32
      %29 = vector.broadcast %cst_11 : f32 to vector<18x18x64xf32>
      %c0_12 = arith.constant 0 : index
      %c0_13 = arith.constant 0 : index
      %c0_14 = arith.constant 0 : index
      %30 = vector.load %arg6[%c0_12, %c0_13, %c0_14] : memref<18x18x64xf32, #tpu.memory_space<vmem>>, vector<18x18x64xf32>
      tpu.vector_store %arg6[%c0_12, %c0_13, %c0_14], %29 {strides = array<i32>} : memref<18x18x64xf32, #tpu.memory_space<vmem>>, vector<18x18x64xf32>,
      %c0_15 = arith.constant 0 : index
      %c0_16 = arith.constant 0 : index
      %c0_17 = arith.constant 0 : index
      %c0_18 = arith.constant 0 : index
      %31 = vector.load %arg2[%c0_15, %c0_16, %c0_17, %c0_18] : memref<1x16x16x64xf32, #tpu.memory_space<vmem>>, vector<1x16x16x64xf32>
      %32 = vector.shape_cast %31 : vector<1x16x16x64xf32> to vector<16x16x64xf32>
      %c1 = arith.constant 1 : index
      %c1_19 = arith.constant 1 : index
      %c0_20 = arith.constant 0 : index
      %33 = vector.load %arg6[%c1, %c1_19, %c0_20] : memref<18x18x64xf32, #tpu.memory_space<vmem>>, vector<16x16x64xf32>
      tpu.vector_store %arg6[%c1, %c1_19, %c0_20], %32 {strides = array<i32>} : memref<18x18x64xf32, #tpu.memory_space<vmem>>, vector<16x16x64xf32>,
    } else {
    }
    %c0 = arith.constant 0 : index
    %c0_1 = arith.constant 0 : index
    %c0_2 = arith.constant 0 : index
    %3 = vector.load %arg6[%c0, %c0_1, %c0_2] : memref<18x18x64xf32, #tpu.memory_space<vmem>>, vector<18x18x64xf32>
    %4 = arith.truncf %3 : vector<18x18x64xf32> to vector<18x18x64xbf16>
    %5 = vector.extract_strided_slice %4 {offsets = [0, 0, 0], sizes = [16, 16, 64], strides = [1, 1, 1]} : vector<18x18x64xbf16> to vector<16x16x64xbf16>
    %6 = vector.extract_strided_slice %4 {offsets = [0, 1, 0], sizes = [16, 16, 64], strides = [1, 1, 1]} : vector<18x18x64xbf16> to vector<16x16x64xbf16>
    %7 = vector.extract_strided_slice %4 {offsets = [0, 2, 0], sizes = [16, 16, 64], strides = [1, 1, 1]} : vector<18x18x64xbf16> to vector<16x16x64xbf16>
    %8 = vector.extract_strided_slice %4 {offsets = [1, 0, 0], sizes = [16, 16, 64], strides = [1, 1, 1]} : vector<18x18x64xbf16> to vector<16x16x64xbf16>
    %9 = vector.extract_strided_slice %4 {offsets = [1, 1, 0], sizes = [16, 16, 64], strides = [1, 1, 1]} : vector<18x18x64xbf16> to vector<16x16x64xbf16>
    %10 = vector.extract_strided_slice %4 {offsets = [1, 2, 0], sizes = [16, 16, 64], strides = [1, 1, 1]} : vector<18x18x64xbf16> to vector<16x16x64xbf16>
    %11 = vector.extract_strided_slice %4 {offsets = [2, 0, 0], sizes = [16, 16, 64], strides = [1, 1, 1]} : vector<18x18x64xbf16> to vector<16x16x64xbf16>
    %12 = vector.extract_strided_slice %4 {offsets = [2, 1, 0], sizes = [16, 16, 64], strides = [1, 1, 1]} : vector<18x18x64xbf16> to vector<16x16x64xbf16>
    %13 = vector.extract_strided_slice %4 {offsets = [2, 2, 0], sizes = [16, 16, 64], strides = [1, 1, 1]} : vector<18x18x64xbf16> to vector<16x16x64xbf16>
    %14 = tpu.concatenate %5, %6, %7, %8, %9, %10, %11, %12, %13 in 2 : vector<16x16x64xbf16>, vector<16x16x64xbf16>, vector<16x16x64xbf16>, vector<16x16x64xbf16>, vector<16x16x64xbf16>, vector<16x16x64xbf16>, vector<16x16x64xbf16>, vector<16x16x64xbf16>, vector<16x16x64xbf16> -> vector<16x16x576xbf16>
    %c0_3 = arith.constant 0 : index
    %c0_4 = arith.constant 0 : index
    %c0_5 = arith.constant 0 : index
    %15 = vector.load %arg3[%c0_3, %c0_4, %c0_5] : memref<1x576x64xbf16, #tpu.memory_space<vmem>>, vector<1x576x64xbf16>
    %16 = vector.shape_cast %15 : vector<1x576x64xbf16> to vector<576x64xbf16>
    %cst = arith.constant dense<0.000000e+00> : vector<16x16x64xf32>
    %17 = tpu.matmul %14, %16, %cst {dimension_numbers = #tpu.dot_dimension_numbers<[2], [0], [0, 1], [1], [0, 0, 0, 1, 1, 1], [], []>} : vector<16x16x576xbf16>, vector<576x64xbf16>, vector<16x16x64xf32> -> vector<16x16x64xf32>
    %c0_6 = arith.constant 0 : index
    %c0_7 = arith.constant 0 : index
    %c0_8 = arith.constant 0 : index
    %18 = vector.load %arg4[%c0_6, %c0_7, %c0_8] : memref<1x1x64xf32, #tpu.memory_space<vmem>>, vector<1x1x64xf32>
    %19 = vector.shape_cast %18 : vector<1x1x64xf32> to vector<64xf32>
    %20 = vector.shape_cast %19 : vector<64xf32> to vector<1x1x64xf32>
    %21 = vector.broadcast %20 : vector<1x1x64xf32> to vector<16x16x64xf32>
    %22 = arith.addf %17, %21 : vector<16x16x64xf32>
    %c19_i32 = arith.constant 19 : i32
    %23 = arith.cmpi eq, %arg1, %c19_i32 : i32
    %true = arith.constant true
    %24 = arith.xori %23, %true : i1
    %25 = arith.extui %24 : i1 to i32
    %c0_i32_9 = arith.constant 0 : i32
    %26 = arith.cmpi ne, %25, %c0_i32_9 : i32
    scf.if %26 {
      %cst_11 = arith.constant 0.000000e+00 : f32
      %29 = vector.broadcast %cst_11 : f32 to vector<16x16x64xf32>
      %30 = arith.maximumf %22, %29 : vector<16x16x64xf32>
      %c1 = arith.constant 1 : index
      %c1_12 = arith.constant 1 : index
      %c0_13 = arith.constant 0 : index
      %31 = vector.load %arg6[%c1, %c1_12, %c0_13] : memref<18x18x64xf32, #tpu.memory_space<vmem>>, vector<16x16x64xf32>
      tpu.vector_store %arg6[%c1, %c1_12, %c0_13], %30 {strides = array<i32>} : memref<18x18x64xf32, #tpu.memory_space<vmem>>, vector<16x16x64xf32>,
    } else {
    }
    %27 = arith.extui %23 : i1 to i32
    %c0_i32_10 = arith.constant 0 : i32
    %28 = arith.cmpi ne, %27, %c0_i32_10 : i32
    scf.if %28 {
      %cst_11 = arith.constant dense<0.000000e+00> : vector<16x16xf32>
      %29 = vector.multi_reduction <add>, %22, %cst_11 [2] : vector<16x16x64xf32> to vector<16x16xf32>
      %c0_12 = arith.constant 0 : index
      %c0_13 = arith.constant 0 : index
      %c0_14 = arith.constant 0 : index
      %c0_15 = arith.constant 0 : index
      %30 = vector.load %arg2[%c0_12, %c0_13, %c0_14, %c0_15] : memref<1x16x16x64xf32, #tpu.memory_space<vmem>>, vector<1x16x16x64xf32>
      %31 = vector.shape_cast %30 : vector<1x16x16x64xf32> to vector<16x16x64xf32>
      %cst_16 = arith.constant dense<0.000000e+00> : vector<16x16xf32>
      %32 = vector.multi_reduction <add>, %31, %cst_16 [2] : vector<16x16x64xf32> to vector<16x16xf32>
      %33 = arith.addf %29, %32 : vector<16x16xf32>
      %c0_17 = arith.constant 0 : index
      %c0_18 = arith.constant 0 : index
      %c0_19 = arith.constant 0 : index
      %34 = vector.load %arg5[%c0_17, %c0_18, %c0_19] : memref<1x16x16xf32, #tpu.memory_space<vmem>>, vector<1x16x16xf32>
      %35 = vector.shape_cast %34 : vector<1x16x16xf32> to vector<16x16xf32>
      %36 = vector.shape_cast %33 : vector<16x16xf32> to vector<1x16x16xf32>
      tpu.vector_store %arg5[%c0_17, %c0_18, %c0_19], %36 {strides = array<i32>} : memref<1x16x16xf32, #tpu.memory_space<vmem>>, vector<1x16x16xf32>,
    } else {
    }
    return
  }
  func.func @transform_0(%arg0: i32, %arg1: i32) -> (i32, i32, i32, i32) {
    %c0_i32 = arith.constant 0 : i32
    %c0_i32_0 = arith.constant 0 : i32
    %c0_i32_1 = arith.constant 0 : i32
    %c0_i32_2 = arith.constant 0 : i32
    return %arg0, %c0_i32, %c0_i32_0, %c0_i32_1 : i32, i32, i32, i32
  }
  func.func @transform_1(%arg0: i32, %arg1: i32) -> (i32, i32, i32) {
    %c0_i32 = arith.constant 0 : i32
    %c0_i32_0 = arith.constant 0 : i32
    %c0_i32_1 = arith.constant 0 : i32
    return %arg1, %c0_i32, %c0_i32_0 : i32, i32, i32
  }
  func.func @transform_2(%arg0: i32, %arg1: i32) -> (i32, i32, i32) {
    %c0_i32 = arith.constant 0 : i32
    %c0_i32_0 = arith.constant 0 : i32
    %c0_i32_1 = arith.constant 0 : i32
    return %arg1, %c0_i32, %c0_i32_0 : i32, i32, i32
  }
  func.func @transform_3(%arg0: i32, %arg1: i32) -> (i32, i32, i32) {
    %c0_i32 = arith.constant 0 : i32
    %c0_i32_0 = arith.constant 0 : i32
    %c0_i32_1 = arith.constant 0 : i32
    return %arg0, %c0_i32, %c0_i32_0 : i32, i32, i32
  }
}

</mosaic_0001>

<bundles_post_ra>
// kernel: vdsr_forward.1
= control target key start
LH: loop header
LB: loop body
LE: loop exit
PB: predicated region body
PF: predicated region fallthrough
CT: control target
= control target key end

     0   :  { %8 = vsyncpa [#allocation4], 0  ;;  %s4381_s0 = inlined_call_operand.vmem [shape: f32[2,16,16,64], index: 0, kind: input, shape index: {}]   ;;  %s4382_s1 = inlined_call_operand.vmem [shape: bf16[20,576,64], index: 1, kind: input, shape index: {}]   ;;  %s4383_s2 = inlined_call_operand.vmem [shape: f32[20,1,64], index: 2, kind: input, shape index: {}]   ;;  %s4384_s3 = inlined_call_operand.hbm [shape: f32[2,16,16], index: 3, kind: output, shape index: {}]  }
   0x1   :  { %10 = vsyncpa [#allocation4 + $0x1], 0  ;;  %s3082_s12 = smov 0   ;;  %s3084_s13 = smov 0  }
   0x2   :  { %s3086_s14 = smov 0   ;;  %s3088_s15 = smov 0  }
   0x3   :  { %s3090_s16 = smov 0   ;;  %s3092_s17 = smov 0  }
   0x4   :  { %s3094_s18 = smov 0   ;;  %s3096_s19 = smov 0  }
   0x5 LB: > { %s2477_s20 = sadd.s32 4294967295, %s3055_s19   ;;  %s2478_s21 = sadd.s32 4294967294, %s3055_s19   ;;  %s3055_s19 = sphi %s3096_s19, %s16_s19   ;;  %s3051_s18 = sphi %s3094_s18, %s4407_s18   ;;  %s3047_s17 = sphi %s3092_s17, %s4406_s17   ;;  %s3043_s16 = sphi %s3090_s16, %s4405_s16   ;;  %s3039_s15 = sphi %s3088_s15, %s4404_s15   ;;  %s3035_s14 = sphi %s3086_s14, %s4403_s14   ;;  %s3031_s13 = sphi %s3084_s13, %s4402_s13   ;;  %s3027_s12 = sphi %s3082_s12, %s4401_s12  }
   0x6   : > { %s25_s22 = sadd.s32 1, %s3047_s17  ;;  %s28_s23 = sadd.s32 1, %s3051_s18 }
   0x7   : > { %p26_p0 = scmp.ge.s32.totalorder %s25_s22, 20  ;;  %p123_p1 = scmp.ne.s32.totalorder %s3035_s14, %s3031_s13 }
   0x8   : > { %p124_p2 = scmp.eq.s32.totalorder %s2477_s20, 39  ;;  %p129_p4 = scmp.ne.s32.totalorder %s3031_s13, %s3027_s12 }
   0x9   : > { %s4409_s22 = smov (%p26_p0, %s25_s22), 0  ;;  %s4411_s23 = smov (!%p26_p0, %s28_s23), %s3051_s18 }
   0xa   : > { %p3131_p3 = por %p124_p2, %p123_p1  ;;  %p30_p5 = scmp.ge.s32.totalorder %s4411_s23, 2 }
   0xb   : > { %p130_p6 = scmp.eq.s32.totalorder %s2478_s21, 39  ;;  %p2481_p7 = scmp.ge.s32.totalorder %s3055_s19, 1 }
   0xc   : > { %p170_p8 = scmp.lt.s32.totalorder %s3055_s19, 41  ;;  %s4413_s23 = smov (%p30_p5, %s4411_s23), 0 }
   0xd   : > { %4391 = sst [smem:[#allocation6_spill]] %s4413_s23  ;;  %p3141_p9 = por %p130_p6, %p129_p4 }
   0xe   : > { %p171_p10 = pnand %p2481_p7, %p170_p8  ;;  %s110_s26 = ssub.s32 %s3051_s18, %s4413_s23 }
   0xf   : > { %s113_s27 = sadd.s32 1, %s3035_s14  ;;  %p111_p11 = scmp.eq.s32.totalorder %s110_s26, 0 }
  0x10   : > { %174 = sbr.rel (%p171_p10) target bundleno = 879 (0x36f), region = 32 }
  0x11   : > { %s3149_s28 = scalar_select %p111_p11, %s3035_s14, %s113_s27  }
  0x17   : > { %s4385_s29 = sand.u32 1, %s3031_s13   ;;  %p202_p12 = scmp.lt.s32.totalorder %s3043_s16, 1 }
  0x18   : > { %s2482_s30 = sshll.u32 %s4385_s29, 4  ;;  %p207_p13 = scmp.lt.s32.totalorder %s3039_s15, 19 }
  0x19   : > { %s203_s4 = scalar_select %p202_p12, %s3043_s16, 1 }
  0x1a   : > { %s3158_s5 = scalar_select %p207_p13, %s3039_s15, 19 }
  0x1b   : > { %s2547_s6 = sshll.u32 %s203_s4, 8  ;;  %s3175_s23 = scalar_lea.vmem [#allocation3], %s2482_s30 }
  0x1c   : > { %s3163_s9 = scalar_lea.vmem %s4381_s0, %s2547_s6  ;;  %s2849_s10 = smul.u32 288, %s3158_s5 }
  0x1d   : > { %s214_s21 = scalar_lea.vmem %s4383_s2, %s3158_s5  ;;  %p2486_p0 = scmp.ne.s32.totalorder %s3039_s15, 0 }
  0x1e   : > { %s3173_s29 = scalar_lea.vmem %s4382_s1, %s2849_s10  ;;  %vm220_vm0 = vcmask (!%p2486_p0), 523264   ;;  %vm223_vm1 = vcmask (!%p2486_p0), 517120   ;;  %v276_v0 = vld [vmem:[%s3163_s9] sm:$0xff] (!%p2486_p0)  ;;  %v277_v1 = vld [vmem:[%s3163_s9 + $0x8] sm:$0xff] (!%p2486_p0)  ;;  %v278_v2 = vld [vmem:[%s3163_s9 + $0x10] sm:$0xff] (!%p2486_p0)  ;;  %v3057_v3 = vmov (!%p2486_p0), 0.0  }
  0x1f   : > { %219 = sbr.rel (%p2486_p0) target bundleno = 74 (0x4a), region = 36  ;;  %225 = vst.msk [vmem:[#allocation2 + $0x18] sm:$0xff] (!%p2486_p0), %vm220_vm0, %v3057_v3  ;;  %221 = vst.msk [vmem:[#allocation2] sm:$0xff] (!%p2486_p0), %vm220_vm0, %v3057_v3  ;;  %v279_v4 = vld [vmem:[%s3163_s9 + $0x18] sm:$0xff] (!%p2486_p0)  ;;  %v280_v5 = vld [vmem:[%s3163_s9 + $0x20] sm:$0xff] (!%p2486_p0) }
  0x20   : > { %222 = vst.msk [vmem:[#allocation2 + $0x8] sm:$0xff] (!%p2486_p0), %vm220_vm0, %v3057_v3  ;;  %226 = vst.msk [vmem:[#allocation2 + $0x20] sm:$0xff] (!%p2486_p0), %vm220_vm0, %v3057_v3  ;;  %v281_v6 = vld [vmem:[%s3163_s9 + $0x28] sm:$0xff] (!%p2486_p0)  ;;  %v282_v7 = vld [vmem:[%s3163_s9 + $0x30] sm:$0xff] (!%p2486_p0) }
  0x21   : > { %228 = vst.msk [vmem:[#allocation2 + $0x30] sm:$0xff] (!%p2486_p0), %vm220_vm0, %v3057_v3  ;;  %229 = vst.msk [vmem:[#allocation2 + $0x38] sm:$0xff] (!%p2486_p0), %vm220_vm0, %v3057_v3  ;;  %v283_v8 = vld [vmem:[%s3163_s9 + $0x38] sm:$0xff] (!%p2486_p0)  ;;  %v284_v9 = vld [vmem:[%s3163_s9 + $0x40] sm:$0xff] (!%p2486_p0) }
  0x22   : > { %231 = vst.msk [vmem:[#allocation2 + $0x48] sm:$0xff] (!%p2486_p0), %vm220_vm0, %v3057_v3  ;;  %232 = vst.msk [vmem:[#allocation2 + $0x50] sm:$0xff] (!%p2486_p0), %vm220_vm0, %v3057_v3  ;;  %v285_v10 = vld [vmem:[%s3163_s9 + $0x48] sm:$0xff] (!%p2486_p0)  ;;  %v286_v11 = vld [vmem:[%s3163_s9 + $0x50] sm:$0xff] (!%p2486_p0) }
  0x23   : > { %234 = vst.msk [vmem:[#allocation2 + $0x60] sm:$0xff] (!%p2486_p0), %vm220_vm0, %v3057_v3  ;;  %235 = vst.msk [vmem:[#allocation2 + $0x68] sm:$0xff] (!%p2486_p0), %vm220_vm0, %v3057_v3  ;;  %v287_v12 = vld [vmem:[%s3163_s9 + $0x58] sm:$0xff] (!%p2486_p0)  ;;  %v288_v13 = vld [vmem:[%s3163_s9 + $0x60] sm:$0xff] (!%p2486_p0) }
  0x24   : > { %237 = vst.msk [vmem:[#allocation2 + $0x78] sm:$0xff] (!%p2486_p0), %vm220_vm0, %v3057_v3  ;;  %238 = vst.msk [vmem:[#allocation2 + $0x80] sm:$0xff] (!%p2486_p0), %vm220_vm0, %v3057_v3  ;;  %v289_v14 = vld [vmem:[%s3163_s9 + $0x68] sm:$0xff] (!%p2486_p0)  ;;  %v290_v15 = vld [vmem:[%s3163_s9 + $0x70] sm:$0xff] (!%p2486_p0) }
  0x25   : > { %240 = vst.msk [vmem:[#allocation2 + $0x90] sm:$0xff] (!%p2486_p0), %vm220_vm0, %v3057_v3  ;;  %241 = vst.msk [vmem:[#allocation2 + $0x98] sm:$0xff] (!%p2486_p0), %vm220_vm0, %v3057_v3  ;;  %v291_v16 = vld [vmem:[%s3163_s9 + $0x78] sm:$0xff] (!%p2486_p0)  ;;  %v292_v17 = vld [vmem:[%s3163_s9 + $0x80] sm:$0xff] (!%p2486_p0) }
  0x26   : > { %243 = vst.msk [vmem:[#allocation2 + $0xa8] sm:$0xff] %vm220_vm0, %v3057_v3  ;;  %244 = vst.msk [vmem:[#allocation2 + $0xb0] sm:$0xff] %vm220_vm0, %v3057_v3  ;;  %v293_v18 = vld [vmem:[%s3163_s9 + $0x88] sm:$0xff]  ;;  %v294_v19 = vld [vmem:[%s3163_s9 + $0x90] sm:$0xff] }
  0x27   : > { %246 = vst.msk [vmem:[#allocation2 + $0xc0] sm:$0xff] %vm220_vm0, %v3057_v3  ;;  %247 = vst.msk [vmem:[#allocation2 + $0xc8] sm:$0xff] %vm220_vm0, %v3057_v3  ;;  %v295_v20 = vld [vmem:[%s3163_s9 + $0x98] sm:$0xff]  ;;  %v296_v21 = vld [vmem:[%s3163_s9 + $0xa0] sm:$0xff] }
  0x28   : > { %249 = vst.msk [vmem:[#allocation2 + $0xd8] sm:$0xff] %vm220_vm0, %v3057_v3  ;;  %250 = vst.msk [vmem:[#allocation2 + $0xe0] sm:$0xff] %vm220_vm0, %v3057_v3  ;;  %v297_v22 = vld [vmem:[%s3163_s9 + $0xa8] sm:$0xff]  ;;  %v298_v23 = vld [vmem:[%s3163_s9 + $0xb0] sm:$0xff] }
  0x29   : > { %252 = vst.msk [vmem:[#allocation2 + $0xf0] sm:$0xff] %vm220_vm0, %v3057_v3  ;;  %253 = vst.msk [vmem:[#allocation2 + $0xf8] sm:$0xff] %vm220_vm0, %v3057_v3  ;;  %v299_v24 = vld [vmem:[%s3163_s9 + $0xb8] sm:$0xff]  ;;  %v300_v25 = vld [vmem:[%s3163_s9 + $0xc0] sm:$0xff] }
  0x2a   : > { %255 = vst.msk [vmem:[#allocation2 + $0x108] sm:$0xff] %vm220_vm0, %v3057_v3  ;;  %256 = vst.msk [vmem:[#allocation2 + $0x110] sm:$0xff] %vm220_vm0, %v3057_v3  ;;  %v301_v26 = vld [vmem:[%s3163_s9 + $0xc8] sm:$0xff]  ;;  %v302_v27 = vld [vmem:[%s3163_s9 + $0xd0] sm:$0xff] }
  0x2b   : > { %258 = vst.msk [vmem:[#allocation2 + $0x120] sm:$0xff] %vm220_vm0, %v3057_v3  ;;  %259 = vst.msk [vmem:[#allocation2 + $0x128] sm:$0xff] %vm220_vm0, %v3057_v3  ;;  %v303_v28 = vld [vmem:[%s3163_s9 + $0xd8] sm:$0xff]  ;;  %v304_v29 = vld [vmem:[%s3163_s9 + $0xe0] sm:$0xff] }
  0x2c   : > { %261 = vst.msk [vmem:[#allocation2 + $0x138] sm:$0xff] %vm220_vm0, %v3057_v3  ;;  %262 = vst.msk [vmem:[#allocation2 + $0x140] sm:$0xff] %vm220_vm0, %v3057_v3  ;;  %v305_v30 = vld [vmem:[%s3163_s9 + $0xe8] sm:$0xff]  ;;  %v306_v31 = vld [vmem:[%s3163_s9 + $0xf0] sm:$0xff] }
  0x2d   : > { %264 = vst.msk [vmem:[#allocation2 + $0x150] sm:$0xff] %vm220_vm0, %v3057_v3  ;;  %265 = vst.msk [vmem:[#allocation2 + $0x158] sm:$0xff] %vm220_vm0, %v3057_v3  ;;  %v307_v32 = vld [vmem:[%s3163_s9 + $0xf8] sm:$0xff] }
  0x2e   : > { %267 = vst.msk [vmem:[#allocation2 + $0x168] sm:$0xff] %vm220_vm0, %v3057_v3  ;;  %268 = vst.msk [vmem:[#allocation2 + $0x170] sm:$0xff] %vm220_vm0, %v3057_v3 }
  0x2f   : > { %270 = vst.msk [vmem:[#allocation2 + $0x180] sm:$0xff] %vm220_vm0, %v3057_v3  ;;  %271 = vst.msk [vmem:[#allocation2 + $0x188] sm:$0xff] %vm220_vm0, %v3057_v3 }
  0x30   : > { %273 = vst.msk [vmem:[#allocation2 + $0x198] sm:$0xff] %vm220_vm0, %v3057_v3  ;;  %274 = vst.msk [vmem:[#allocation2 + $0x1a0] sm:$0xff] %vm220_vm0, %v3057_v3 }
  0x31   : > { %227 = vst.msk [vmem:[#allocation2 + $0x28] sm:$0x3] %vm223_vm1, %v3057_v3  ;;  %224 = vst.msk [vmem:[#allocation2 + $0x10] sm:$0x3] %vm223_vm1, %v3057_v3 }
  0x32   : > { %230 = vst.msk [vmem:[#allocation2 + $0x40] sm:$0x3] %vm223_vm1, %v3057_v3  ;;  %233 = vst.msk [vmem:[#allocation2 + $0x58] sm:$0x3] %vm223_vm1, %v3057_v3 }
  0x33   : > { %236 = vst.msk [vmem:[#allocation2 + $0x70] sm:$0x3] %vm223_vm1, %v3057_v3  ;;  %239 = vst.msk [vmem:[#allocation2 + $0x88] sm:$0x3] %vm223_vm1, %v3057_v3 }
  0x34   : > { %242 = vst.msk [vmem:[#allocation2 + $0xa0] sm:$0x3] %vm223_vm1, %v3057_v3  ;;  %245 = vst.msk [vmem:[#allocation2 + $0xb8] sm:$0x3] %vm223_vm1, %v3057_v3 }
  0x35   : > { %248 = vst.msk [vmem:[#allocation2 + $0xd0] sm:$0x3] %vm223_vm1, %v3057_v3  ;;  %251 = vst.msk [vmem:[#allocation2 + $0xe8] sm:$0x3] %vm223_vm1, %v3057_v3 }
  0x36   : > { %254 = vst.msk [vmem:[#allocation2 + $0x100] sm:$0x3] %vm223_vm1, %v3057_v3  ;;  %257 = vst.msk [vmem:[#allocation2 + $0x118] sm:$0x3] %vm223_vm1, %v3057_v3 }
  0x37   : > { %260 = vst.msk [vmem:[#allocation2 + $0x130] sm:$0x3] %vm223_vm1, %v3057_v3  ;;  %263 = vst.msk [vmem:[#allocation2 + $0x148] sm:$0x3] %vm223_vm1, %v3057_v3 }
  0x38   : > { %266 = vst.msk [vmem:[#allocation2 + $0x160] sm:$0x3] %vm223_vm1, %v3057_v3  ;;  %269 = vst.msk [vmem:[#allocation2 + $0x178] sm:$0x3] %vm223_vm1, %v3057_v3 }
  0x39   : > { %272 = vst.msk [vmem:[#allocation2 + $0x190] sm:$0x3] %vm223_vm1, %v3057_v3  ;;  %275 = vst.msk [vmem:[#allocation2 + $0x1a8] sm:$0x3] %vm223_vm1, %v3057_v3 }
  0x3a   : > { %309 = vst.msk [vmem:[#allocation2 + $0x19] sm:$0xff] %vm220_vm0, %v276_v0  ;;  %310 = vst.msk [vmem:[#allocation2 + $0x21] sm:$0xff] %vm220_vm0, %v277_v1 }
  0x3b   : > { %311 = vst.msk [vmem:[#allocation2 + $0x31] sm:$0xff] %vm220_vm0, %v278_v2  ;;  %312 = vst.msk [vmem:[#allocation2 + $0x39] sm:$0xff] %vm220_vm0, %v279_v4 }
  0x3c   : > { %313 = vst.msk [vmem:[#allocation2 + $0x49] sm:$0xff] %vm220_vm0, %v280_v5  ;;  %314 = vst.msk [vmem:[#allocation2 + $0x51] sm:$0xff] %vm220_vm0, %v281_v6 }
  0x3d   : > { %315 = vst.msk [vmem:[#allocation2 + $0x61] sm:$0xff] %vm220_vm0, %v282_v7  ;;  %316 = vst.msk [vmem:[#allocation2 + $0x69] sm:$0xff] %vm220_vm0, %v283_v8 }
  0x3e   : > { %317 = vst.msk [vmem:[#allocation2 + $0x79] sm:$0xff] %vm220_vm0, %v284_v9  ;;  %318 = vst.msk [vmem:[#allocation2 + $0x81] sm:$0xff] %vm220_vm0, %v285_v10 }
  0x3f   : > { %319 = vst.msk [vmem:[#allocation2 + $0x91] sm:$0xff] %vm220_vm0, %v286_v11  ;;  %320 = vst.msk [vmem:[#allocation2 + $0x99] sm:$0xff] %vm220_vm0, %v287_v12 }
  0x40   : > { %321 = vst.msk [vmem:[#allocation2 + $0xa9] sm:$0xff] %vm220_vm0, %v288_v13  ;;  %322 = vst.msk [vmem:[#allocation2 + $0xb1] sm:$0xff] %vm220_vm0, %v289_v14 }
  0x41   : > { %323 = vst.msk [vmem:[#allocation2 + $0xc1] sm:$0xff] %vm220_vm0, %v290_v15  ;;  %324 = vst.msk [vmem:[#allocation2 + $0xc9] sm:$0xff] %vm220_vm0, %v291_v16 }
  0x42   : > { %325 = vst.msk [vmem:[#allocation2 + $0xd9] sm:$0xff] %vm220_vm0, %v292_v17  ;;  %326 = vst.msk [vmem:[#allocation2 + $0xe1] sm:$0xff] %vm220_vm0, %v293_v18 }
  0x43   : > { %327 = vst.msk [vmem:[#allocation2 + $0xf1] sm:$0xff] %vm220_vm0, %v294_v19  ;;  %328 = vst.msk [vmem:[#allocation2 + $0xf9] sm:$0xff] %vm220_vm0, %v295_v20 }
  0x44   : > { %329 = vst.msk [vmem:[#allocation2 + $0x109] sm:$0xff] %vm220_vm0, %v296_v21  ;;  %330 = vst.msk [vmem:[#allocation2 + $0x111] sm:$0xff] %vm220_vm0, %v297_v22 }
  0x45   : > { %331 = vst.msk [vmem:[#allocation2 + $0x121] sm:$0xff] %vm220_vm0, %v298_v23  ;;  %332 = vst.msk [vmem:[#allocation2 + $0x129] sm:$0xff] %vm220_vm0, %v299_v24 }
  0x46   : > { %333 = vst.msk [vmem:[#allocation2 + $0x139] sm:$0xff] %vm220_vm0, %v300_v25  ;;  %334 = vst.msk [vmem:[#allocation2 + $0x141] sm:$0xff] %vm220_vm0, %v301_v26 }
  0x47   : > { %335 = vst.msk [vmem:[#allocation2 + $0x151] sm:$0xff] %vm220_vm0, %v302_v27  ;;  %336 = vst.msk [vmem:[#allocation2 + $0x159] sm:$0xff] %vm220_vm0, %v303_v28 }
  0x48   : > { %337 = vst.msk [vmem:[#allocation2 + $0x169] sm:$0xff] %vm220_vm0, %v304_v29  ;;  %338 = vst.msk [vmem:[#allocation2 + $0x171] sm:$0xff] %vm220_vm0, %v305_v30 }
  0x49   : > { %339 = vst.msk [vmem:[#allocation2 + $0x181] sm:$0xff] %vm220_vm0, %v306_v31  ;;  %340 = vst.msk [vmem:[#allocation2 + $0x189] sm:$0xff] %vm220_vm0, %v307_v32 }
  0x4a PF: > { %v344_v35 = vld [vmem:[#allocation2 + $0x18] sm:$0xff]  ;;  %v341_v43 = vld [vmem:[#allocation2] sm:$0xff]  ;;  %s3058_s30 = smov 64   ;;  %v343_v46 = vld [vmem:[#allocation2 + $0x10] sm:$0x3]  ;;  %vm688_vm3 = vcmask 1046528  }
  0x4b   : > { %v345_v37 = vld [vmem:[#allocation2 + $0x20] sm:$0xff]  ;;  %v342_v44 = vld [vmem:[#allocation2 + $0x8] sm:$0xff]  ;;  %v3313_v51 = vpack.c.bf16 %v343_v46, %v343_v46  ;;  %vm431_vm2 = vsmask.f32 7424  ;;  %vm839_vm4 = vcmask 523264   ;;  %p2540_p1 = scmp.eq.s32.totalorder %s3039_s15, 19 }
  0x4c   : > { %v377_v38 = vld [vmem:[#allocation2 + $0x120] sm:$0xff]  ;;  %v378_v39 = vld [vmem:[#allocation2 + $0x128] sm:$0xff]  ;;  %v3298_v40 = vpack.c.bf16 %v345_v37, %v344_v35  ;;  %v379_v41 = vld [vmem:[#allocation2 + $0x130] sm:$0x3]  ;;  %v3306_v47 = vpack.c.bf16 %v342_v44, %v341_v43 }
  0x4d   : > { %v380_v33 = vld [vmem:[#allocation2 + $0x138] sm:$0xff]  ;;  %v381_v34 = vld [vmem:[#allocation2 + $0x140] sm:$0xff]  ;;  %v3300_v42 = vpack.c.bf16 %v378_v39, %v377_v38  ;;  %v3304_v45 = vpack.c.bf16 %v379_v41, %v379_v41  ;;  %v382_v52 = vld [vmem:[#allocation2 + $0x148] sm:$0x3]  ;;  %v440_v60 = vshll.u32 %v3313_v51, 16 }
  0x4e   : > { %v3296_v36 = vpack.c.bf16 %v381_v34, %v380_v33  ;;  %738 = vrot.lane.b32.xlu1 %v3298_v40, %s3058_s30  ;;  %v433_v55 = vshrl.u32 %v3306_v47, 16  ;;  %v435_v56 = vshll.u32 %v3306_v47, 16  ;;  %v3319_v57 = vpack.c.bf16 %v382_v52, %v382_v52  ;;  %v346_v58 = vld [vmem:[#allocation2 + $0x28] sm:$0x3]  ;;  %v383_v61 = vld [vmem:[#allocation2 + $0x150] sm:$0xff]  ;;  %v384_v1 = vld [vmem:[#allocation2 + $0x158] sm:$0xff] }
  0x4f   : > { %v577_v49 = vshrl.u32 %v3300_v42, 16  ;;  %v579_v50 = vshll.u32 %v3300_v42, 16  ;;  %v584_v54 = vshll.u32 %v3304_v45, 16  ;;  %v3323_v3 = vpack.c.bf16 %v346_v58, %v346_v58  ;;  %v385_v4 = vld [vmem:[#allocation2 + $0x160] sm:$0x3]  ;;  %v347_v8 = vld [vmem:[#allocation2 + $0x30] sm:$0xff] }
  0x50   : > { %762 = vrot.lane.b32.xlu0 %v3296_v36, %s3058_s30  ;;  %v591_v48 = vshll.u32 %v3296_v36, 16  ;;  %v589_v53 = vshrl.u32 %v3296_v36, 16  ;;  %v437_v0 = vrot.slane %v435_v56, 1  ;;  %v596_v2 = vshll.u32 %v3319_v57, 16  ;;  %v348_v9 = vld [vmem:[#allocation2 + $0x38] sm:$0xff]  ;;  %v386_v23 = vld [vmem:[#allocation2 + $0x168] sm:$0xff] }
  0x51   : > { %v581_v59 = vrot.slane %v579_v50, 1  ;;  %v586_v63 = vrot.slane %v584_v54, 1  ;;  %v442_v6 = vrot.slane %v440_v60, 1  ;;  %v445_v10 = vshrl.u32 %v3298_v40, 16  ;;  %v349_v15 = vld [vmem:[#allocation2 + $0x40] sm:$0x3] }
  0x52   : > { %v593_v62 = vrot.slane %v591_v48, 1  ;;  %v438_v11 = vor.u32 %v437_v0, %v433_v55  ;;  %v598_v12 = vrot.slane %v596_v2, 1  ;;  %v447_v13 = vshll.u32 %v3298_v40, 16  ;;  %v387_v24 = vld [vmem:[#allocation2 + $0x170] sm:$0xff]  ;;  %v388_v32 = vld [vmem:[#allocation2 + $0x178] sm:$0x3] }
  0x53   : > { %v582_v5 = vor.u32 %v581_v59, %v577_v49  ;;  %v452_v14 = vshll.u32 %v3323_v3, 16  ;;  %v3331_v17 = vpack.c.bf16 %v384_v1, %v383_v61  ;;  %v3333_v18 = vpack.c.bf16 %v385_v4, %v385_v4  ;;  %v350_v35 = vld [vmem:[#allocation2 + $0x48] sm:$0xff]  ;;  %v351_v37 = vld [vmem:[#allocation2 + $0x50] sm:$0xff]  ;;  %v352_v50 = vld [vmem:[#allocation2 + $0x58] sm:$0x3] }
  0x54   : > { %v594_v7 = vor.u32 %v593_v62, %v589_v53  ;;  %v443_v19 = vsel %vm431_vm2, %v438_v11, %v442_v6  ;;  %v3338_v20 = vpack.c.bf16 %v348_v9, %v347_v8  ;;  %v449_v21 = vrot.slane %v447_v13, 1  ;;  %v2925_v52 = vld [vmem:[%s3173_s29 + $0x40] sm:$0xff]   ;;  %v2927_v60 = vld [vmem:[%s3173_s29 + $0x48] sm:$0xff]  }
  0x55   : > { %v3329_v16 = vsel %vm431_vm2, %v582_v5, %v586_v63  ;;  %624 = vrot.lane.b32.xlu1 %v443_v19, %s3058_s30  ;;  %v601_v25 = vshrl.u32 %v3331_v17, 16  ;;  %v603_v26 = vshll.u32 %v3331_v17, 16  ;;  %v3346_v27 = vpack.c.bf16 %v349_v15, %v349_v15  ;;  %2833 = vmatprep.subr.bf16.mxu1 %v2925_v52  ;;  %v2926_v59 = vld [vmem:[%s3173_s29] sm:$0xff]   ;;  %v390_v2 = vld [vmem:[#allocation2 + $0x188] sm:$0xff]  ;;  %v2930_v19 = vld [vmem:[%s3173_s29 + $0x10] sm:$0xff]  }
  0x56   : > { %648 = vrot.lane.b32.xlu0 %v3329_v16, %s3058_s30  ;;  %v3342_v22 = vsel %vm431_vm2, %v594_v7, %v598_v12  ;;  %v450_v28 = vor.u32 %v449_v21, %v445_v10  ;;  %v454_v29 = vrot.slane %v452_v14, 1  ;;  %v608_v30 = vshll.u32 %v3333_v18, 16  ;;  %2549 = vmatprep.subr.bf16.mxu0 %v2925_v52  ;;  %v389_v1 = vld [vmem:[#allocation2 + $0x180] sm:$0xff]  ;;  %v2928_v5 = vld [vmem:[%s3173_s29 + $0x8] sm:$0xff]   ;;  %v355_v7 = vld [vmem:[#allocation2 + $0x70] sm:$0x3] }
  0x57   : > { %v459_v31 = vshll.u32 %v3338_v20, 16  ;;  %v605_v33 = vrot.slane %v603_v26, 1  ;;  %v3352_v34 = vpack.c.bf16 %v387_v24, %v386_v23  ;;  %v457_v38 = vshrl.u32 %v3338_v20, 16  ;;  %v353_v4 = vld [vmem:[#allocation2 + $0x60] sm:$0xff]  ;;  %2841 = vmatpush3.bf16.msra.mxu1 %v2926_v59  ;;  %2550 = vmatpush3.bf16.msra.mxu0 %v2926_v59  ;;  %v354_v6 = vld [vmem:[#allocation2 + $0x68] sm:$0xff]  ;;  %v2929_v14 = vld [vmem:[%s3173_s29 + $0x50] sm:$0xff]  }
  0x58   : > { %v464_v41 = vshll.u32 %v3346_v27, 16  ;;  %v3358_v43 = vpack.c.bf16 %v388_v32, %v388_v32  ;;  %v3361_v44 = vsel %vm431_vm2, %v450_v28, %v454_v29  ;;  %v610_v48 = vrot.slane %v608_v30, 1  ;;  %2834 = vmatprep.subr.bf16.mxu1 %v2927_v60  ;;  %2551 = vmatprep.subr.bf16.mxu0 %v2927_v60  ;;  %v2931_v23 = vld [vmem:[%s3173_s29 + $0x58] sm:$0xff]   ;;  %v358_v32 = vld [vmem:[#allocation2 + $0x88] sm:$0x3] }
  0x59   : > { %650 = vrot.lane.b32.xlu1 %v3342_v22, %s3058_s30  ;;  %v461_v39 = vrot.slane %v459_v31, 1  ;;  %v606_v46 = vor.u32 %v605_v33, %v601_v25  ;;  %v615_v49 = vshll.u32 %v3352_v34, 16  ;;  %v3367_v53 = vpack.c.bf16 %v351_v37, %v350_v35  ;;  %v356_v24 = vld [vmem:[#allocation2 + $0x78] sm:$0xff]  ;;  %v357_v25 = vld [vmem:[#allocation2 + $0x80] sm:$0xff] }
  0x5a   : > { %764 = vrot.lane.b32.xlu0 %v3331_v17, %s3058_s30  ;;  %v613_v54 = vshrl.u32 %v3352_v34, 16  ;;  %v466_v56 = vrot.slane %v464_v41, 1  ;;  %v620_v58 = vshll.u32 %v3358_v43, 16  ;;  %v3378_v63 = vpack.c.bf16 %v352_v50, %v352_v50  ;;  %v2932_v33 = vld [vmem:[%s3173_s29 + $0x18] sm:$0xff]   ;;  %v2933_v41 = vld [vmem:[%s3173_s29 + $0x60] sm:$0xff]   ;;  %v359_v50 = vld [vmem:[#allocation2 + $0x90] sm:$0xff] }
  0x5b   : > { %v462_v55 = vor.u32 %v461_v39, %v457_v38  ;;  %v3376_v61 = vsel %vm431_vm2, %v606_v46, %v610_v48  ;;  %v617_v62 = vrot.slane %v615_v49, 1  ;;  %v471_v0 = vshll.u32 %v3367_v53, 16  ;;  %2842 = vmatpush3.bf16.msra.mxu1 %v2928_v5  ;;  %2552 = vmatpush3.bf16.msra.mxu0 %v2928_v5 }
  0x5c   : > { %4393 = vst [vmem:[#allocation7_spill] sm:$0xff] %v3376_v61  ;;  %v622_v8 = vrot.slane %v620_v58, 1  ;;  %v469_v9 = vshrl.u32 %v3367_v53, 16  ;;  %v476_v13 = vshll.u32 %v3378_v63, 16  ;;  %v3392_v15 = vpack.c.bf16 %v354_v6, %v353_v4  ;;  %2835 = vmatprep.subr.bf16.mxu1 %v2929_v14  ;;  %2553 = vmatprep.subr.bf16.mxu0 %v2929_v14  ;;  %v362_v6 = vld [vmem:[#allocation2 + $0xa8] sm:$0xff] }
  0x5d   : > { %626 = vrot.lane.b32.xlu1 %v3361_v44, %s3058_s30  ;;  %v3388_v10 = vsel %vm431_vm2, %v462_v55, %v466_v56  ;;  %v618_v11 = vor.u32 %v617_v62, %v613_v54  ;;  %v473_v12 = vrot.slane %v471_v0, 1  ;;  %v3397_v21 = vpack.c.bf16 %v390_v2, %v389_v1  ;;  %v360_v54 = vld [vmem:[#allocation2 + $0x98] sm:$0xff]  ;;  %v2934_v55 = vld [vmem:[%s3173_s29 + $0x20] sm:$0xff]   ;;  %v2935_v56 = vld [vmem:[%s3173_s29 + $0x68] sm:$0xff]  }
  0x5e   : > { %740 = vrot.lane.b32.xlu0 %v3338_v20, %s3058_s30  ;;  %v3402_v26 = vpack.c.bf16 %v355_v7, %v355_v7  ;;  %v483_v28 = vshll.u32 %v3392_v15, 16  ;;  %v478_v31 = vrot.slane %v476_v13, 1  ;;  %v692_v35 = vrot.slane %v3298_v40, 1  ;;  %v361_v0 = vld [vmem:[#allocation2 + $0xa0] sm:$0x3]  ;;  %v363_v7 = vld [vmem:[#allocation2 + $0xb0] sm:$0xff] }
  0x5f   : > { %v3406_v29 = vsel %vm431_vm2, %v618_v11, %v622_v8  ;;  %v474_v30 = vor.u32 %v473_v12, %v469_v9  ;;  %2843 = vmatpush3.bf16.msra.mxu1 %v2930_v19  ;;  %2554 = vmatpush3.bf16.msra.mxu0 %v2930_v19  ;;  %v693_v37 = vrot.slane %v3323_v3, 1  ;;  %v3413_v38 = vpack.c.bf16 %v357_v25, %v356_v24  ;;  %v2936_v9 = vld [vmem:[%s3173_s29 + $0x28] sm:$0xff]   ;;  %v364_v14 = vld [vmem:[#allocation2 + $0xb8] sm:$0x3] }
  0x60   : > { %4394 = vst [vmem:[#allocation8_spill] sm:$0xff] %v3406_v29  ;;  %v481_v39 = vshrl.u32 %v3392_v15, 16  ;;  %2836 = vmatprep.subr.bf16.mxu1 %v2931_v23  ;;  %v485_v46 = vrot.slane %v483_v28, 1  ;;  %v488_v48 = vshll.u32 %v3402_v26, 16  ;;  %2555 = vmatprep.subr.bf16.mxu0 %v2931_v23  ;;  %v3423_v3 = vpack.c.bf16 %v358_v32, %v358_v32  ;;  %v2938_v28 = vld [vmem:[%s3173_s29 + $0x30] sm:$0xff]  }
  0x61   : > { %652 = vrot.lane.b32.xlu1 %v3376_v61, %s3058_s30  ;;  %v3421_v49 = vsel %vm431_vm2, %v474_v30, %v478_v31  ;;  %v495_v52 = vshll.u32 %v3413_v38, 16  ;;  %v3433_v58 = vsel %vm688_vm3, %v692_v35, %v693_v37  ;;  %v695_v62 = vrot.slane %v3338_v20, 1 }
  0x62   : > { %766 = vrot.lane.b32.xlu0 %v3352_v34, %s3058_s30  ;;  %v486_v59 = vor.u32 %v485_v46, %v481_v39  ;;  %v490_v60 = vrot.slane %v488_v48, 1  ;;  %v696_v1 = vrot.slane %v3346_v27, 1  ;;  %v493_v2 = vshrl.u32 %v3413_v38, 16  ;;  %v2937_v27 = vld [vmem:[%s3173_s29 + $0x70] sm:$0xff]   ;;  %v365_v48 = vld [vmem:[#allocation2 + $0xc0] sm:$0xff] }
  0x63   : > { %2844 = vmatpush3.bf16.msra.mxu1 %v2932_v33  ;;  %2556 = vmatpush3.bf16.msra.mxu0 %v2932_v33  ;;  %v497_v4 = vrot.slane %v495_v52, 1  ;;  %v500_v5 = vshll.u32 %v3423_v3, 16  ;;  %v3439_v8 = vpack.c.bf16 %v360_v54, %v359_v50  ;;  %v3444_v11 = vpack.c.bf16 %v361_v0, %v361_v0  ;;  %v2939_v33 = vld [vmem:[%s3173_s29 + $0x78] sm:$0xff]   ;;  %v366_v54 = vld [vmem:[#allocation2 + $0xc8] sm:$0xff] }
  0x64   : > { %2837 = vmatprep.subr.bf16.mxu1 %v2933_v41  ;;  %2557 = vmatprep.subr.bf16.mxu0 %v2933_v41  ;;  %v3450_v12 = vsel %vm431_vm2, %v486_v59, %v490_v60  ;;  %v3454_v19 = vsel %vm688_vm3, %v695_v62, %v696_v1  ;;  %v3456_v25 = vpack.c.bf16 %v363_v7, %v362_v6  ;;  %v698_v30 = vrot.slane %v3367_v53, 1  ;;  %v367_v60 = vld [vmem:[#allocation2 + $0xd0] sm:$0x3]  ;;  %v2941_v62 = vld [vmem:[%s3173_s29 + $0xc0] sm:$0xff]  }
  0x65   : > { %628 = vrot.lane.b32.xlu1 %v3388_v10, %s3058_s30  ;;  %v507_v13 = vshll.u32 %v3439_v8, 16  ;;  %v498_v23 = vor.u32 %v497_v4, %v493_v2  ;;  %v502_v24 = vrot.slane %v500_v5, 1  ;;  %v512_v31 = vshll.u32 %v3444_v11, 16  ;;  %v3488_v2 = vld [vmem:[%s3173_s29 + $0x100] sm:$0xff]   ;;  %v368_v5 = vld [vmem:[#allocation2 + $0xd8] sm:$0xff] }
  0x66   : > { %742 = vrot.lane.b32.xlu0 %v3367_v53, %s3058_s30  ;;  %v3463_v32 = vpack.c.bf16 %v364_v14, %v364_v14  ;;  %v699_v35 = vrot.slane %v3378_v63, 1  ;;  %v505_v37 = vshrl.u32 %v3439_v8, 16  ;;  %v519_v41 = vshll.u32 %v3456_v25, 16  ;;  %v2940_v63 = vld [vmem:[%s3173_s29 + $0x38] sm:$0xff]   ;;  %v369_v7 = vld [vmem:[#allocation2 + $0xe0] sm:$0xff] }
  0x67   : > { %2845 = vmatpush3.bf16.msra.mxu1 %v2934_v55  ;;  %2558 = vmatpush3.bf16.msra.mxu0 %v2934_v55  ;;  %v509_v39 = vrot.slane %v507_v13, 1  ;;  %v3472_v46 = vsel %vm431_vm2, %v498_v23, %v502_v24  ;;  %v701_v50 = vrot.slane %v3392_v15, 1  ;;  %v702_v52 = vrot.slane %v3402_v26, 1  ;;  %v370_v13 = vld [vmem:[#allocation2 + $0xe8] sm:$0x3] }
  0x68   : > { %2838 = vmatprep.subr.bf16.mxu1 %v2935_v56  ;;  %2559 = vmatprep.subr.bf16.mxu0 %v2935_v56  ;;  %v514_v55 = vrot.slane %v512_v31, 1  ;;  %v517_v56 = vshrl.u32 %v3456_v25, 16  ;;  %v524_v59 = vshll.u32 %v3463_v32, 16  ;;  %v3485_v26 = vsel %vm688_vm3, %v698_v30, %v699_v35 }
  0x69   : > { %654 = vrot.lane.b32.xlu1 %v3406_v29, %s3058_s30  ;;  %v510_v0 = vor.u32 %v509_v39, %v505_v37  ;;  %v521_v1 = vrot.slane %v519_v41, 1  ;;  %v3490_v4 = vpack.c.bf16 %v366_v54, %v365_v48  ;;  %v3504_v14 = vsel %vm688_vm3, %v701_v50, %v702_v52  ;;  %v371_v50 = vld [vmem:[#allocation2 + $0xf0] sm:$0xff] }
  0x6a   : > { %768 = vrot.lane.b32.xlu0 %v3397_v21, %s3058_s30  ;;  %v526_v24 = vrot.slane %v524_v59, 1  ;;  %v705_v30 = vrot.slane %v3423_v3, 1  ;;  %v3510_v31 = vpack.c.bf16 %v369_v7, %v368_v5  ;;  %v3519_v41 = vpack.c.bf16 %v370_v13, %v370_v13  ;;  %v372_v3 = vld [vmem:[#allocation2 + $0xf8] sm:$0xff]  ;;  %v374_v7 = vld [vmem:[#allocation2 + $0x108] sm:$0xff] }
  0x6b   : > { %2846 = vmatpush3.bf16.msra.mxu1 %v2936_v9  ;;  %2560 = vmatpush3.bf16.msra.mxu0 %v2936_v9  ;;  %v3497_v6 = vsel %vm431_vm2, %v510_v0, %v514_v55  ;;  %v3499_v9 = vpack.c.bf16 %v367_v60, %v367_v60  ;;  %v522_v23 = vor.u32 %v521_v1, %v517_v56  ;;  %v707_v55 = vrot.slane %v3439_v8, 1  ;;  %v373_v0 = vld [vmem:[#allocation2 + $0x100] sm:$0x3] }
  0x6c   : > { %2839 = vmatprep.subr.bf16.mxu1 %v2937_v27  ;;  %2561 = vmatprep.subr.bf16.mxu0 %v2937_v27  ;;  %v531_v27 = vshll.u32 %v3490_v4, 16  ;;  %v543_v48 = vshll.u32 %v3510_v31, 16  ;;  %v708_v56 = vrot.slane %v3444_v11, 1  ;;  %v541_v59 = vshrl.u32 %v3510_v31, 16 }
  0x6d   : > { %630 = vrot.lane.b32.xlu1 %v3421_v49, %s3058_s30  ;;  %v536_v37 = vshll.u32 %v3499_v9, 16  ;;  %v3517_v39 = vsel %vm431_vm2, %v522_v23, %v526_v24  ;;  %v3533_v1 = vpack.c.bf16 %v372_v3, %v371_v50  ;;  %v416_v11 = vpack.c.bf16 %v373_v0, %v373_v0 }
  0x6e   : > { %744 = vrot.lane.b32.xlu0 %v3392_v15, %s3058_s30  ;;  %v533_v35 = vrot.slane %v531_v27, 1  ;;  %v545_v60 = vrot.slane %v543_v48, 1  ;;  %v375_v27 = vld [vmem:[#allocation2 + $0x110] sm:$0xff]  ;;  %v3544_v23 = vsel %vm688_vm3, %v707_v55, %v708_v56 }
  0x6f   : > { %2847 = vmatpush3.bf16.msra.mxu1 %v2938_v28  ;;  %2562 = vmatpush3.bf16.msra.mxu0 %v2938_v28  ;;  %v704_v28 = vrot.slane %v3413_v38, 1  ;;  %v555_v13 = vshll.u32 %v3533_v1, 16  ;;  %v553_v48 = vshrl.u32 %v3533_v1, 16  ;;  %v560_v3 = vshll.u32 %v416_v11, 16 }
  0x70   : > { %2840 = vmatprep.subr.bf16.mxu1 %v2939_v33  ;;  %2563 = vmatprep.subr.bf16.mxu0 %v2939_v33  ;;  %v529_v33 = vshrl.u32 %v3490_v4, 16  ;;  %v546_v24 = vor.u32 %v545_v60, %v541_v59  ;;  %v713_v60 = vrot.slane %v3490_v4, 1 }
  0x71   : > { %746 = vrot.lane.b32.xlu1 %v3413_v38, %s3058_s30  ;;  %v3527_v52 = vsel %vm688_vm3, %v704_v28, %v705_v30  ;;  %v376_v30 = vld [vmem:[#allocation2 + $0x118] sm:$0x3]  ;;  %v557_v50 = vrot.slane %v555_v13, 1  ;;  %v562_v59 = vrot.slane %v560_v3, 1  ;;  %v391_v3 = vld [vmem:[#allocation2 + $0x190] sm:$0x3] }
  0x72   : > { %786 = vrot.lane.b32.xlu0 %v3433_v58, %s3058_s30  ;;  %v534_v54 = vor.u32 %v533_v35, %v529_v33  ;;  %v710_v33 = vrot.slane %v3456_v25, 1  ;;  %v3549_v35 = vpack.c.bf16 %v375_v27, %v374_v7 }
  0x73   : > { %2848 = vmatpush3.bf16.msra.mxu1 %v2940_v63  ;;  %2564 = vmatpush3.bf16.msra.mxu0 %v2940_v63  ;;  %v538_v63 = vrot.slane %v536_v37, 1  ;;  %v711_v37 = vrot.slane %v3463_v32, 1  ;;  %v558_v32 = vor.u32 %v557_v50, %v553_v48  ;;  %v719_v48 = vrot.slane %v3533_v1, 1 }
  0x74   : > { %2661 = vmatprep.subr.bf16.mxu1 %v2941_v62  ;;  %2793 = vmatprep.subr.bf16.mxu0 %v3488_v2  ;;  %v548_v62 = vshll.u32 %v3519_v41, 16  ;;  %v567_v55 = vshll.u32 %v3549_v35, 16  ;;  %v565_v0 = vshrl.u32 %v3549_v35, 16  ;;  %v720_v50 = vrot.slane %v416_v11, 1 }
  0x75   : > { %788 = vrot.lane.b32.xlu1 %v3454_v19, %s3058_s30  ;;  %v3540_v5 = vsel %vm431_vm2, %v534_v54, %v538_v63  ;;  %v418_v63 = vpack.c.bf16 %v376_v30, %v376_v30  ;;  %v3564_v56 = vsel %vm688_vm3, %v710_v33, %v711_v37  ;;  %v3574_v13 = vsel %vm431_vm2, %v558_v32, %v562_v59  ;;  %v393_v32 = vld [vmem:[#allocation2 + $0x1a0] sm:$0xff] }
  0x76   : > { %632 = vrot.lane.b32.xlu0 %v3450_v12, %s3058_s30  ;;  %v550_v28 = vrot.slane %v548_v62, 1  ;;  %v714_v62 = vrot.slane %v3499_v9, 1  ;;  %v569_v7 = vrot.slane %v567_v55, 1  ;;  %v716_v9 = vrot.slane %v3510_v31, 1  ;;  %v392_v55 = vld [vmem:[#allocation2 + $0x198] sm:$0xff] }
  0x77   : > { %v572_v27 = vshll.u32 %v418_v63, 16  ;;  %v717_v33 = vrot.slane %v3519_v41, 1  ;;  %v773_v41 = vshll.u32 %v3397_v21, 16  ;;  %v3601_v11 = vsel %vm688_vm3, %v719_v48, %v720_v50 }
  0x78   : > { %v3556_v54 = vsel %vm431_vm2, %v546_v24, %v550_v28  ;;  %v3577_v24 = vsel %vm688_vm3, %v713_v60, %v714_v62  ;;  %v570_v28 = vor.u32 %v569_v7, %v565_v0  ;;  %v722_v60 = vrot.slane %v3549_v35, 1 }
  0x79   : > { %634 = vrot.lane.b32.xlu1 %v3472_v46, %s3058_s30  ;;  %v574_v30 = vrot.slane %v572_v27, 1  ;;  %v3592_v59 = vsel %vm688_vm3, %v716_v9, %v717_v33  ;;  %v723_v62 = vrot.slane %v418_v63, 1  ;;  %v428_v0 = vpack.c.bf16 %v391_v3, %v391_v3  ;;  %v394_v27 = vld [vmem:[#allocation2 + $0x1a8] sm:$0x3] }
  0x7a   : > { %748 = vrot.lane.b32.xlu0 %v3439_v8, %s3058_s30  ;;  %v3598_v7 = vpack.c.bf16 %v393_v32, %v392_v55  ;;  %v771_v9 = vshrl.u32 %v3397_v21, 16  ;;  %v775_v33 = vrot.slane %v773_v41, 1  ;;  %v3613_v48 = vpack.c.bf16 %v394_v27, %v394_v27 }
  0x7b   : > { %v3586_v37 = vsel %vm431_vm2, %v570_v28, %v574_v30  ;;  %v725_v28 = vrot.slane %v3300_v42, 1  ;;  %v726_v30 = vrot.slane %v3304_v45, 1  ;;  %v3611_v63 = vsel %vm688_vm3, %v722_v60, %v723_v62 }
  0x7c   : > { %v778_v3 = vshll.u32 %v428_v0, 16  ;;  %4395 = vst [vmem:[#allocation9_spill] sm:$0xff] %v3613_v48  ;;  %v821_v50 = vshll.u32 %v3598_v7, 16  ;;  %v728_v55 = vrot.slane %v3296_v36, 1  ;;  %v729_v32 = vrot.slane %v3319_v57, 1 }
  0x7d   : > { %750 = vrot.lane.b32.xlu1 %v3456_v25, %s3058_s30  ;;  %v3619_v45 = vsel %vm688_vm3, %v725_v28, %v726_v30  ;;  %v731_v41 = vrot.slane %v3331_v17, 1  ;;  %v732_v60 = vrot.slane %v3333_v18, 1  ;;  %v776_v62 = vor.u32 %v775_v33, %v771_v9 }
  0x7e   : > { %790 = vrot.lane.b32.xlu0 %v3485_v26, %s3058_s30  ;;  %v780_v27 = vrot.slane %v778_v3, 1  ;;  %v819_v29 = vshrl.u32 %v3598_v7, 16  ;;  %v823_v61 = vrot.slane %v821_v50, 1  ;;  %v826_v57 = vshll.u32 %v3613_v48, 16 }
  0x7f   : > { %v3630_v28 = vsel %vm688_vm3, %v728_v55, %v729_v32  ;;  %v3635_v30 = vsel %vm688_vm3, %v731_v41, %v732_v60  ;;  %v734_v18 = vrot.slane %v3352_v34, 1  ;;  %v735_v9 = vrot.slane %v3358_v43, 1 }
  0x80   : > { %v3642_v33 = vsel %vm431_vm2, %v776_v62, %v780_v27  ;;  %v824_v3 = vor.u32 %v823_v61, %v819_v29  ;;  %v828_v50 = vrot.slane %v826_v57, 1  ;;  %v783_v55 = vrot.slane %v3397_v21, 1 }
  0x81   : > { %792 = vrot.lane.b32.xlu1 %v3504_v14, %s3058_s30  ;;  %v784_v32 = vrot.slane %v428_v0, 1  ;;  %v3646_v48 = vsel %vm688_vm3, %v734_v18, %v735_v9  ;;  %v689_v61 = vrot.slane %v3306_v47, 1  ;;  %v690_v29 = vrot.slane %v3313_v51, 1  ;;  %v2942_v18 = vld [vmem:[%s3173_s29 + $0x80] sm:$0xff]  }
  0x82   : > { %636 = vrot.lane.b32.xlu0 %v3497_v6, %s3058_s30  ;;  %v829_v43 = vsel %vm431_vm2, %v824_v3, %v828_v50  ;;  %v2943_v3 = vld [vmem:[%s3173_s29 + $0xc8] sm:$0xff]  }
  0x83   : > { %v3654_v41 = vsel %vm688_vm3, %v783_v55, %v784_v32  ;;  %v691_v0 = vsel %vm688_vm3, %v689_v61, %v690_v29  ;;  %v2957_v55 = vld [vmem:[%s3173_s29 + $0x108] sm:$0xff]   ;;  %v2946_v29 = vld [vmem:[%s3173_s29 + $0xd0] sm:$0xff]  }
  0x85   : > { %638 = vrot.lane.b32.xlu1 %v3517_v39, %s3058_s30 }
  0x86   : > { %752 = vrot.lane.b32.xlu0 %v3490_v4, %s3058_s30 }
  0x89   : > { %754 = vrot.lane.b32.xlu1 %v3510_v31, %s3058_s30 }
  0x8a   : > { %794 = vrot.lane.b32.xlu0 %v3527_v52, %s3058_s30 }
  0x8d   : > { %796 = vrot.lane.b32.xlu1 %v3544_v23, %s3058_s30 }
  0x8e   : > { %640 = vrot.lane.b32.xlu0 %v3540_v5, %s3058_s30 }
  0x91   : > { %642 = vrot.lane.b32.xlu1 %v3556_v54, %s3058_s30 }
  0x92   : > { %756 = vrot.lane.b32.xlu0 %v3533_v1, %s3058_s30 }
  0x95   : > { %758 = vrot.lane.b32.xlu1 %v3549_v35, %s3058_s30 }
  0x96   : > { %798 = vrot.lane.b32.xlu0 %v3564_v56, %s3058_s30 }
  0x99   : > { %800 = vrot.lane.b32.xlu1 %v3577_v24, %s3058_s30 }
  0x9a   : > { %644 = vrot.lane.b32.xlu0 %v3574_v13, %s3058_s30 }
  0x9d   : > { %646 = vrot.lane.b32.xlu1 %v3586_v37, %s3058_s30 }
  0x9e   : > { %760 = vrot.lane.b32.xlu0 %v3300_v42, %s3058_s30 }
  0xa1   : > { %804 = vrot.lane.b32.xlu1 %v3601_v11, %s3058_s30 }
  0xa2   : > { %802 = vrot.lane.b32.xlu0 %v3592_v59, %s3058_s30 }
  0xa5   : > { %808 = vrot.lane.b32.xlu1 %v3619_v45, %s3058_s30 }
  0xa6   : > { %806 = vrot.lane.b32.xlu0 %v3611_v63, %s3058_s30 }
  0xa9   : > { %812 = vrot.lane.b32.xlu1 %v3635_v30, %s3058_s30 }
  0xaa   : > { %810 = vrot.lane.b32.xlu0 %v3630_v28, %s3058_s30 }
  0xad   : > { %814 = vrot.lane.b32.xlu1 %v3646_v48, %s3058_s30 }
  0xae   : > { %830 = vrot.lane.b32.xlu0 %v3642_v33, %s3058_s30 }
  0xb1   : > { %816 = vrot.lane.b32.xlu1 %v3654_v41, %s3058_s30 }
  0xb2   : > { %832 = vrot.lane.b32.xlu0 %v829_v43, %s3058_s30  ;;  %v2945_v43 = vld [vmem:[%s3173_s29 + $0x88] sm:$0xff]  }
  0xc0   : > { %v739_v62 = vpop.permute.xlu1 %738 }
  0xc1   : > { %v890_v57 = vsel %vm839_vm4, %v691_v0, %v739_v62  ;;  %v2947_v62 = vld [vmem:[%s3173_s29 + $0x90] sm:$0xff]  }
  0xc2   : > { %v763_v60 = vpop.permute.xlu0 %762  ;;  %1383 = vmatprep.mubr.bf16.mxu0 %v890_v57 }
  0xc3   : > { %v938_v27 = vsel %vm839_vm4, %v3619_v45, %v763_v60  ;;  %v2959_v60 = vld [vmem:[%s3173_s29 + $0x110] sm:$0xff]  }
  0xc4   : > { %1479 = vmatprep.mubr.bf16.mxu1 %v938_v27 }
  0xc7   : > { %v625_v50 = vpop.permute.xlu1 %624 }
  0xc8   : > { %v649_v9 = vpop.permute.xlu0 %648  ;;  %v841_v32 = vsel %vm839_vm4, %v3306_v47, %v625_v50 }
  0xc9   : > { %v3669_v51 = vsel %vm839_vm4, %v3300_v42, %v649_v9  ;;  %1384 = vmatmul.mubr.bf16.vlgmr.msra.gmra.mrb[0].mxu0 %v841_v32  ;;  %v2960_v9 = vld [vmem:[%s3173_s29 + $0x118] sm:$0xff]  }
  0xca   : > { %1480 = vmatmul.mubr.bf16.vlgmr.msra.gmra.mrb[0].mxu1 %v3669_v51  ;;  %2794 = vmatpush3.bf16.msra.mxu0 %v3488_v2  ;;  %v2948_v2 = vld [vmem:[%s3173_s29 + $0xd8] sm:$0xff]  }
  0xcb   : > { %2662 = vmatpush3.bf16.msra.mxu1 %v2942_v18  ;;  %v651_v0 = vpop.permute.xlu1 %650  ;;  %2795 = vmatprep.subr.bf16.mxu0 %v2957_v55 }
  0xcc   : > { %v765_v61 = vpop.permute.xlu0 %764  ;;  %2663 = vmatprep.subr.bf16.mxu1 %v2943_v3  ;;  %v3683_v47 = vsel %vm839_vm4, %v3296_v36, %v651_v0  ;;  %v2949_v3 = vld [vmem:[%s3173_s29 + $0x98] sm:$0xff]  }
  0xcd   : > { %v942_v42 = vsel %vm839_vm4, %v3630_v28, %v765_v61 }
  0xce   : > { %1487 = vmatprep.mubr.bf16.mxu1 %v942_v42  ;;  %2796 = vmatpush3.bf16.msra.mxu0 %v2957_v55  ;;  %v2950_v55 = vld [vmem:[%s3173_s29 + $0xe0] sm:$0xff]  }
  0xcf   : > { %2664 = vmatpush3.bf16.msra.mxu1 %v2945_v43  ;;  %v627_v57 = vpop.permute.xlu1 %626  ;;  %2797 = vmatprep.subr.bf16.mxu0 %v2959_v60 }
  0xd0   : > { %v741_v27 = vpop.permute.xlu0 %740  ;;  %2665 = vmatprep.subr.bf16.mxu1 %v2946_v29  ;;  %v844_v36 = vsel %vm839_vm4, %v3298_v40, %v627_v57  ;;  %v2951_v40 = vld [vmem:[%s3173_s29 + $0xa0] sm:$0xff]   ;;  %v2952_v29 = vld [vmem:[%s3173_s29 + $0xe8] sm:$0xff]  }
  0xd1   : > { %v894_v18 = vsel %vm839_vm4, %v3433_v58, %v741_v27  ;;  %v2954_v27 = vld [vmem:[%s3173_s29 + $0xf0] sm:$0xff]  }
  0xd2   : > { %1391 = vmatprep.mubr.bf16.mxu0 %v894_v18  ;;  %1488 = vmatmul.mubr.bf16.gmra.mrb[4].mxu1 %v3683_v47 }
  0xd3   : > { %2666 = vmatpush3.bf16.msra.mxu1 %v2947_v62  ;;  %1392 = vmatmul.mubr.bf16.gmra.mrb[4].mxu0 %v844_v36  ;;  %v653_v32 = vpop.permute.xlu1 %652 }
  0xd4   : > { %v767_v50 = vpop.permute.xlu0 %766  ;;  %2667 = vmatprep.subr.bf16.mxu1 %v2948_v2  ;;  %2798 = vmatpush3.bf16.msra.mxu0 %v2959_v60  ;;  %v3699_v43 = vsel %vm839_vm4, %v3331_v17, %v653_v32  ;;  %v2953_v17 = vld [vmem:[%s3173_s29 + $0xa8] sm:$0xff]   ;;  %v2958_v32 = vld [vmem:[%s3173_s29 + $0xb8] sm:$0xff]  }
  0xd5   : > { %v946_v58 = vsel %vm839_vm4, %v3635_v30, %v767_v50  ;;  %2799 = vmatprep.subr.bf16.mxu0 %v2960_v9 }
  0xd6   : > { %1495 = vmatprep.mubr.bf16.mxu1 %v946_v58 }
  0xd7   : > { %2668 = vmatpush3.bf16.msra.mxu1 %v2949_v3  ;;  %v629_v0 = vpop.permute.xlu1 %628 }
  0xd8   : > { %v743_v61 = vpop.permute.xlu0 %742  ;;  %2669 = vmatprep.subr.bf16.mxu1 %v2950_v55  ;;  %2800 = vmatpush3.bf16.msra.mxu0 %v2960_v9  ;;  %v847_v60 = vsel %vm839_vm4, %v3338_v20, %v629_v0  ;;  %v2955_v9 = vld [vmem:[%s3173_s29 + $0xb0] sm:$0xff]   ;;  %v2956_v20 = vld [vmem:[%s3173_s29 + $0xf8] sm:$0xff]  }
  0xd9   : > { %v898_v42 = vsel %vm839_vm4, %v3454_v19, %v743_v61 }
  0xda   : > { %1399 = vmatprep.mubr.bf16.mxu0 %v898_v42  ;;  %1496 = vmatmul.mubr.bf16.gmra.mrb[8].mxu1 %v3699_v43 }
  0xdb   : > { %2670 = vmatpush3.bf16.msra.mxu1 %v2951_v40  ;;  %1400 = vmatmul.mubr.bf16.gmra.mrb[8].mxu0 %v847_v60  ;;  %v655_v2 = vpop.permute.xlu1 %654 }
  0xdc   : > { %v769_v62 = vpop.permute.xlu0 %768  ;;  %2671 = vmatprep.subr.bf16.mxu1 %v2952_v29  ;;  %v3714_v18 = vsel %vm839_vm4, %v3352_v34, %v655_v2 }
  0xdd   : > { %v950_v57 = vsel %vm839_vm4, %v3646_v48, %v769_v62 }
  0xde   : > { %1503 = vmatprep.mubr.bf16.mxu1 %v950_v57 }
  0xdf   : > { %2672 = vmatpush3.bf16.msra.mxu1 %v2953_v17  ;;  %v631_v3 = vpop.permute.xlu1 %630 }
  0xe0   : > { %v745_v36 = vpop.permute.xlu0 %744  ;;  %2673 = vmatprep.subr.bf16.mxu1 %v2954_v27  ;;  %v850_v55 = vsel %vm839_vm4, %v3367_v53, %v631_v3 }
  0xe1   : > { %v902_v50 = vsel %vm839_vm4, %v3485_v26, %v745_v36 }
  0xe2   : > { %1407 = vmatprep.mubr.bf16.mxu0 %v902_v50  ;;  %1504 = vmatmul.mubr.bf16.gmra.mrb[12].mxu1 %v3714_v18 }
  0xe3   : > { %2674 = vmatpush3.bf16.msra.mxu1 %v2955_v9  ;;  %1408 = vmatmul.mubr.bf16.gmra.mrb[12].mxu0 %v850_v55  ;;  %v747_v58 = vpop.permute.xlu1 %746 }
  0xe4   : > { %1544 = vmatprep.mubr.bf16.mxu1 %v847_v60  ;;  %2675 = vmatprep.subr.bf16.mxu1 %v2956_v20  ;;  %v787_v34 = vpop.permute.xlu0 %786  ;;  %v906_v40 = vsel %vm839_vm4, %v3504_v14, %v747_v58 }
  0xe5   : > { %v954_v61 = vsel %vm839_vm4, %v3361_v44, %v787_v34  ;;  %1415 = vmatprep.mubr.bf16.mxu0 %v906_v40 }
  0xe7   : > { %2676 = vmatpush3.bf16.msra.mxu1 %v2958_v32  ;;  %v789_v53 = vpop.permute.xlu1 %788 }
  0xe8   : > { %v633_v29 = vpop.permute.xlu0 %632  ;;  %v958_v62 = vsel %vm839_vm4, %v3388_v10, %v789_v53 }
  0xe9   : > { %v853_v0 = vsel %vm839_vm4, %v3392_v15, %v633_v29 }
  0xea   : > { %1545 = vmatmul.mubr.bf16.vlgmr.msra.gmra.mrb[16].mxu1 %v954_v61 }
  0xeb   : > { %1416 = vmatmul.mubr.bf16.gmra.mrb[16].mxu0 %v853_v0  ;;  %1552 = vmatprep.mubr.bf16.mxu1 %v850_v55  ;;  %v635_v60 = vpop.permute.xlu1 %634 }
  0xec   : > { %v749_v42 = vpop.permute.xlu0 %748  ;;  %v856_v44 = vsel %vm839_vm4, %v3413_v38, %v635_v60 }
  0xed   : > { %v910_v17 = vsel %vm839_vm4, %v3527_v52, %v749_v42 }
  0xee   : > { %1423 = vmatprep.mubr.bf16.mxu0 %v910_v17 }
  0xef   : > { %v751_v2 = vpop.permute.xlu1 %750 }
  0xf0   : > { %v791_v27 = vpop.permute.xlu0 %790  ;;  %v914_v15 = vsel %vm839_vm4, %v3544_v23, %v751_v2 }
  0xf1   : > { %v962_v36 = vsel %vm839_vm4, %v3421_v49, %v791_v27 }
  0xf2   : > { %1553 = vmatmul.mubr.bf16.gmra.mrb[20].mxu1 %v958_v62 }
  0xf3   : > { %1424 = vmatmul.mubr.bf16.gmra.mrb[20].mxu0 %v856_v44  ;;  %1560 = vmatprep.mubr.bf16.mxu1 %v853_v0  ;;  %v793_v9 = vpop.permute.xlu1 %792 }
  0xf4   : > { %v637_v57 = vpop.permute.xlu0 %636  ;;  %1431 = vmatprep.mubr.bf16.mxu0 %v914_v15  ;;  %v966_v32 = vsel %vm839_vm4, %v3450_v12, %v793_v9 }
  0xf5   : > { %v859_v10 = vsel %vm839_vm4, %v3439_v8, %v637_v57 }
  0xf7   : > { %v639_v3 = vpop.permute.xlu1 %638 }
  0xf8   : > { %v753_v20 = vpop.permute.xlu0 %752  ;;  %v862_v49 = vsel %vm839_vm4, %v3456_v25, %v639_v3 }
  0xf9   : > { %v918_v38 = vsel %vm839_vm4, %v3564_v56, %v753_v20 }
  0xfa   : > { %1561 = vmatmul.mubr.bf16.gmra.mrb[24].mxu1 %v962_v36 }
  0xfb   : > { %1432 = vmatmul.mubr.bf16.gmra.mrb[24].mxu0 %v859_v10  ;;  %1568 = vmatprep.mubr.bf16.mxu1 %v856_v44  ;;  %v755_v55 = vpop.permute.xlu1 %754 }
  0xfc   : > { %1439 = vmatprep.mubr.bf16.mxu0 %v918_v38  ;;  %v795_v50 = vpop.permute.xlu0 %794  ;;  %v922_v8 = vsel %vm839_vm4, %v3577_v24, %v755_v55 }
  0xfd   : > { %v970_v61 = vsel %vm839_vm4, %v3472_v46, %v795_v50 }
  0xff   : > { %v797_v58 = vpop.permute.xlu1 %796 }
 0x100   : > { %v641_v34 = vpop.permute.xlu0 %640  ;;  %v974_v42 = vsel %vm839_vm4, %v3497_v6, %v797_v58 }
 0x101   : > { %v865_v29 = vsel %vm839_vm4, %v3490_v4, %v641_v34 }
 0x102   : > { %1569 = vmatmul.mubr.bf16.gmra.mrb[28].mxu1 %v966_v32 }
 0x103   : > { %1440 = vmatmul.mubr.bf16.gmra.mrb[28].mxu0 %v862_v49  ;;  %1576 = vmatprep.mubr.bf16.mxu1 %v859_v10  ;;  %v643_v25 = vpop.permute.xlu1 %642 }
 0x104   : > { %1447 = vmatprep.mubr.bf16.mxu0 %v922_v8  ;;  %v757_v40 = vpop.permute.xlu0 %756  ;;  %v868_v60 = vsel %vm839_vm4, %v3510_v31, %v643_v25 }
 0x105   : > { %v926_v12 = vsel %vm839_vm4, %v3592_v59, %v757_v40 }
 0x107   : > { %v759_v53 = vpop.permute.xlu1 %758 }
 0x108   : > { %v799_v0 = vpop.permute.xlu0 %798  ;;  %v930_v46 = vsel %vm839_vm4, %v3601_v11, %v759_v53 }
 0x109   : > { %v978_v62 = vsel %vm839_vm4, %v3517_v39, %v799_v0 }
 0x10a   : > { %1577 = vmatmul.mubr.bf16.gmra.mrb[32].mxu1 %v970_v61 }
 0x10b   : > { %1448 = vmatmul.mubr.bf16.gmra.mrb[32].mxu0 %v865_v29  ;;  %1584 = vmatprep.mubr.bf16.mxu1 %v862_v49  ;;  %v801_v44 = vpop.permute.xlu1 %800 }
 0x10c   : > { %1455 = vmatprep.mubr.bf16.mxu0 %v926_v12  ;;  %v645_v4 = vpop.permute.xlu0 %644  ;;  %v982_v2 = vsel %vm839_vm4, %v3540_v5, %v801_v44 }
 0x10d   : > { %v871_v27 = vsel %vm839_vm4, %v3533_v1, %v645_v4 }
 0x10f   : > { %v647_v31 = vpop.permute.xlu1 %646 }
 0x110   : > { %v761_v17 = vpop.permute.xlu0 %760  ;;  %v874_v15 = vsel %vm839_vm4, %v3549_v35, %v647_v31 }
 0x111   : > { %v934_v6 = vsel %vm839_vm4, %v3611_v63, %v761_v17 }
 0x112   : > { %1585 = vmatmul.mubr.bf16.gmra.mrb[36].mxu1 %v974_v42 }
 0x113   : > { %1456 = vmatmul.mubr.bf16.gmra.mrb[36].mxu0 %v868_v60  ;;  %1592 = vmatprep.mubr.bf16.mxu1 %v865_v29  ;;  %v805_v57 = vpop.permute.xlu1 %804 }
 0x114   : > { %1463 = vmatprep.mubr.bf16.mxu0 %v930_v46  ;;  %v803_v39 = vpop.permute.xlu0 %802  ;;  %v990_v5 = vsel %vm839_vm4, %v3574_v13, %v805_v57 }
 0x115   : > { %v986_v1 = vsel %vm839_vm4, %v3556_v54, %v803_v39 }
 0x11a   : > { %1593 = vmatmul.mubr.bf16.gmra.mrb[40].mxu1 %v978_v62 }
 0x11b   : > { %1464 = vmatmul.mubr.bf16.gmra.mrb[40].mxu0 %v871_v27  ;;  %1600 = vmatprep.mubr.bf16.mxu1 %v868_v60 }
 0x11c   : > { %1471 = vmatprep.mubr.bf16.mxu0 %v934_v6 }
 0x122   : > { %1601 = vmatmul.mubr.bf16.gmra.mrb[44].mxu1 %v982_v2 }
 0x123   : > { %1472 = vmatmul.mubr.bf16.gmra.mrb[44].mxu0 %v874_v15  ;;  %1608 = vmatprep.mubr.bf16.mxu1 %v871_v27 }
 0x124   : > { %2801 = vmatprep.mubr.msk.bf16.mxu0 %vm839_vm4, %v3454_v19  ;;  %v807_v19 = vpop.permute.xlu0 %806 }
 0x12a   : > { %1609 = vmatmul.mubr.bf16.gmra.mrb[48].mxu1 %v986_v1 }
 0x12b   : > { %1616 = vmatprep.mubr.bf16.mxu1 %v874_v15  ;;  %2802 = vmatmul.mubr.msk.bf16.vlgmr.msra.gmra.mrb[48].mxu0 %vm839_vm4, %v3485_v26  ;;  %v994_v26 = vsel %vm839_vm4, %v3586_v37, %v807_v19 }
 0x12c   : > { %2805 = vmatprep.mubr.msk.bf16.mxu0 %vm839_vm4, %v3504_v14  ;;  %v809_v14 = vpop.permute.xlu1 %808 }
 0x132   : > { %1617 = vmatmul.mubr.bf16.gmra.mrb[52].mxu1 %v990_v5 }
 0x133   : > { %1624 = vmatprep.mubr.bf16.mxu1 %v3669_v51  ;;  %2806 = vmatmul.mubr.msk.bf16.gmra.mrb[52].mxu0 %vm839_vm4, %v3527_v52  ;;  %v998_v52 = vsel %vm839_vm4, %v3329_v16, %v809_v14  ;;  %v813_v16 = vpop.permute.xlu1 %812 }
 0x134   : > { %2809 = vmatprep.mubr.msk.bf16.mxu0 %vm839_vm4, %v3544_v23  ;;  %v811_v23 = vpop.permute.xlu0 %810 }
 0x135   : > { %v1002_v35 = vsel %vm839_vm4, %v3342_v22, %v811_v23 }
 0x137   : > { %v815_v22 = vpop.permute.xlu1 %814 }
 0x138   : > { %v831_v54 = vpop.permute.xlu0 %830 }
 0x13a   : > { %1625 = vmatmul.mubr.bf16.gmra.mrb[56].mxu1 %v994_v26 }
 0x13b   : > { %1632 = vmatprep.mubr.bf16.mxu1 %v3683_v47  ;;  %2810 = vmatmul.mubr.msk.bf16.gmra.mrb[56].mxu0 %vm839_vm4, %v3564_v56  ;;  %v4396_v56 = vld [vmem:[#allocation7_spill] sm:$0xff] }
 0x13c   : > { %2813 = vmatprep.mubr.msk.bf16.mxu0 %vm839_vm4, %v3577_v24  ;;  %v1006_v13 = vsel %vm839_vm4, %v4396_v56, %v813_v16  ;;  %v1017_v24 = vsel %vm839_vm4, %v3397_v21, %v831_v54  ;;  %v833_v37 = vpop.permute.xlu0 %832  ;;  %v817_v21 = vpop.permute.xlu1 %816  ;;  %v3851_v54 = vld [vmem:[%s214_s21] ss:$0 sm:$0xff] }
 0x13d   : > { %v1014_v51 = vsel %vm839_vm4, %v3642_v33, %v817_v21 }
 0x142   : > { %1633 = vmatmul.mubr.bf16.gmra.mrb[60].mxu1 %v998_v52 }
 0x143   : > { %1640 = vmatprep.mubr.bf16.mxu1 %v3699_v43  ;;  %2814 = vmatmul.mubr.msk.bf16.gmra.mrb[60].mxu0 %vm839_vm4, %v3592_v59  ;;  %v4397_v59 = vld [vmem:[#allocation8_spill] sm:$0xff] }
 0x144   : > { %2817 = vmatprep.mubr.msk.bf16.mxu0 %vm839_vm4, %v3601_v11  ;;  %v1010_v11 = vsel %vm839_vm4, %v4397_v59, %v815_v22 }
 0x14a   : > { %1641 = vmatmul.mubr.bf16.gmra.mrb[64].mxu1 %v1002_v35 }
 0x14b   : > { %1648 = vmatprep.mubr.bf16.mxu1 %v3714_v18  ;;  %2818 = vmatmul.mubr.msk.bf16.gmra.mrb[64].mxu0 %vm839_vm4, %v3611_v63  ;;  %v1020_v63 = vsel %vm839_vm4, %v3598_v7, %v833_v37 }
 0x14c   : > { %2821 = vmatprep.mubr.msk.bf16.mxu0 %vm839_vm4, %v3619_v45  ;;  %v836_v45 = vrot.slane %v3598_v7, 1 }
 0x152   : > { %1649 = vmatmul.mubr.bf16.gmra.mrb[68].mxu1 %v1006_v13 }
 0x153   : > { %2822 = vmatmul.mubr.msk.bf16.gmra.mrb[68].mxu0 %vm839_vm4, %v3630_v28  ;;  %1656 = vmatprep.mubr.bf16.mxu1 %v1017_v24  ;;  %v4398_v28 = vld [vmem:[#allocation9_spill] sm:$0xff] }
 0x154   : > { %2825 = vmatprep.mubr.msk.bf16.mxu0 %vm839_vm4, %v3635_v30  ;;  %v837_v30 = vrot.slane %v4398_v28, 1 }
 0x156   : > { %v838_v47 = vsel %vm688_vm3, %v836_v45, %v837_v30 }
 0x15a   : > { %1657 = vmatmul.mubr.bf16.gmra.mrb[72].mxu1 %v1010_v11 }
 0x15b   : > { %2826 = vmatmul.mubr.msk.bf16.gmra.mrb[72].mxu0 %vm839_vm4, %v3646_v48  ;;  %1664 = vmatprep.mubr.bf16.mxu1 %v1020_v63 }
 0x15c   : > { %2829 = vmatprep.mubr.msk.bf16.mxu0 %vm839_vm4, %v3654_v41 }
 0x162   : > { %1665 = vmatmul.mubr.bf16.gmra.mrb[76].mxu1 %v1014_v51 }
 0x163   : > { %2830 = vmatmul.mubr.msk.bf16.gmra.mrb[76].mxu0 %vm839_vm4, %v838_v47 }
 0x19c   : > { %v2565_v18 = vpop.f32.mrb[0].mxu0 }
 0x19d   : > { %v2637_v43 = vpop.f32.mrb[0].mxu1  ;;  %v2566_v36 = vpop.f32.mrb[1].mxu0 }
 0x19e   : > { %v2638_v48 = vpop.f32.mrb[1].mxu1  ;;  %v2567_v41 = vadd.f32 %v2566_v36, %v2565_v18  ;;  %v2568_v20 = vpop.f32.mrb[2].mxu0 }
 0x19f   : > { %v3830_v9 = vadd.f32 %v2638_v48, %v2637_v43  ;;  %v2640_v10 = vpop.f32.mrb[2].mxu1  ;;  %v2569_v3 = vpop.f32.mrb[3].mxu0 }
 0x1a0   : > { %v2641_v7 = vpop.f32.mrb[3].mxu1  ;;  %v2570_v50 = vadd.f32 %v2569_v3, %v2568_v20  ;;  %v1386_v24 = vadd.f32 %v2567_v41, %v3851_v54 }
 0x1a1   : > { %v3832_v38 = vadd.f32 %v2641_v7, %v2640_v10 }
 0x1a2   : > { %v1389_v45 = vadd.f32 %v2570_v50, %v3851_v54 }
 0x1a5   : > { %v2643_v33 = vpop.f32.mrb[4].mxu1 }
 0x1a6   : > { %v2571_v55 = vpop.f32.mrb[4].mxu0  ;;  %v2644_v32 = vpop.f32.mrb[5].mxu1 }
 0x1a7   : > { %v3834_v49 = vadd.f32 %v2644_v32, %v2643_v33  ;;  %v2572_v8 = vpop.f32.mrb[5].mxu0  ;;  %v2646_v34 = vpop.f32.mrb[6].mxu1 }
 0x1a8   : > { %v2573_v58 = vadd.f32 %v2572_v8, %v2571_v55  ;;  %v2574_v40 = vpop.f32.mrb[6].mxu0  ;;  %v2647_v61 = vpop.f32.mrb[7].mxu1 }
 0x1a9   : > { %v3836_v29 = vadd.f32 %v2647_v61, %v2646_v34  ;;  %v2575_v12 = vpop.f32.mrb[7].mxu0 }
 0x1aa   : > { %v2576_v25 = vadd.f32 %v2575_v12, %v2574_v40  ;;  %v1394_v10 = vadd.f32 %v2573_v58, %v3851_v54 }
 0x1ac   : > { %v1397_v50 = vadd.f32 %v2576_v25, %v3851_v54 }
 0x1ad   : > { %v2649_v0 = vpop.f32.mrb[8].mxu1 }
 0x1ae   : > { %v2577_v53 = vpop.f32.mrb[8].mxu0  ;;  %v2650_v42 = vpop.f32.mrb[9].mxu1 }
 0x1af   : > { %v3838_v60 = vadd.f32 %v2650_v42, %v2649_v0  ;;  %v2578_v46 = vpop.f32.mrb[9].mxu0  ;;  %v2652_v4 = vpop.f32.mrb[10].mxu1 }
 0x1b0   : > { %v2579_v17 = vadd.f32 %v2578_v46, %v2577_v53  ;;  %v2580_v62 = vpop.f32.mrb[10].mxu0  ;;  %v2653_v44 = vpop.f32.mrb[11].mxu1 }
 0x1b1   : > { %v3840_v27 = vadd.f32 %v2653_v44, %v2652_v4  ;;  %v2581_v6 = vpop.f32.mrb[11].mxu0 }
 0x1b2   : > { %v2582_v31 = vadd.f32 %v2581_v6, %v2580_v62  ;;  %v1402_v58 = vadd.f32 %v2579_v17, %v3851_v54 }
 0x1b4   : > { %v1405_v25 = vadd.f32 %v2582_v31, %v3851_v54 }
 0x1b5   : > { %v2655_v2 = vpop.f32.mrb[12].mxu1 }
 0x1b6   : > { %v2583_v15 = vpop.f32.mrb[12].mxu0  ;;  %v2656_v39 = vpop.f32.mrb[13].mxu1 }
 0x1b7   : > { %v3842_v1 = vadd.f32 %v2656_v39, %v2655_v2  ;;  %v2584_v57 = vpop.f32.mrb[13].mxu0  ;;  %v2658_v5 = vpop.f32.mrb[14].mxu1 }
 0x1b8   : > { %v2585_v19 = vadd.f32 %v2584_v57, %v2583_v15  ;;  %v2586_v26 = vpop.f32.mrb[14].mxu0  ;;  %v2659_v14 = vpop.f32.mrb[15].mxu1 }
 0x1b9   : > { %v3844_v52 = vadd.f32 %v2659_v14, %v2658_v5  ;;  %v2587_v23 = vpop.f32.mrb[15].mxu0 }
 0x1ba   : > { %v2588_v35 = vadd.f32 %v2587_v23, %v2586_v26  ;;  %v1410_v17 = vadd.f32 %v2585_v19, %v3851_v54 }
 0x1bc   : > { %v1413_v31 = vadd.f32 %v2588_v35, %v3851_v54 }
 0x1bd   : > { %v2677_v16 = vpop.f32.mrb[16].mxu1 }
 0x1be   : > { %v2589_v56 = vpop.f32.mrb[16].mxu0  ;;  %v2678_v13 = vpop.f32.mrb[17].mxu1 }
 0x1bf   : > { %v2679_v22 = vadd.f32 %v2678_v13, %v2677_v16  ;;  %v2590_v37 = vpop.f32.mrb[17].mxu0  ;;  %v2680_v59 = vpop.f32.mrb[18].mxu1 }
 0x1c0   : > { %v2591_v11 = vadd.f32 %v2590_v37, %v2589_v56  ;;  %v2592_v63 = vpop.f32.mrb[18].mxu0  ;;  %v2681_v21 = vpop.f32.mrb[19].mxu1 }
 0x1c1   : > { %v2682_v28 = vadd.f32 %v2681_v21, %v2680_v59  ;;  %v2593_v30 = vpop.f32.mrb[19].mxu0  ;;  %v3855_v51 = vadd.f32 %v2679_v22, %v1386_v24 }
 0x1c2   : > { %v2594_v47 = vadd.f32 %v2593_v30, %v2592_v63  ;;  %v1418_v19 = vadd.f32 %v2591_v11, %v3851_v54 }
 0x1c3   : > { %v3857_v43 = vadd.f32 %v2682_v28, %v1389_v45 }
 0x1c4   : > { %v1421_v35 = vadd.f32 %v2594_v47, %v3851_v54 }
 0x1c5   : > { %v2683_v18 = vpop.f32.mrb[20].mxu1 }
 0x1c6   : > { %v2595_v48 = vpop.f32.mrb[20].mxu0  ;;  %v2684_v36 = vpop.f32.mrb[21].mxu1 }
 0x1c7   : > { %v2685_v41 = vadd.f32 %v2684_v36, %v2683_v18  ;;  %v2596_v20 = vpop.f32.mrb[21].mxu0  ;;  %v2686_v7 = vpop.f32.mrb[22].mxu1 }
 0x1c8   : > { %v2597_v3 = vadd.f32 %v2596_v20, %v2595_v48  ;;  %v2598_v33 = vpop.f32.mrb[22].mxu0  ;;  %v2687_v55 = vpop.f32.mrb[23].mxu1 }
 0x1c9   : > { %v2688_v32 = vadd.f32 %v2687_v55, %v2686_v7  ;;  %v2599_v8 = vpop.f32.mrb[23].mxu0  ;;  %v3861_v34 = vadd.f32 %v2685_v41, %v1394_v10 }
 0x1ca   : > { %v2600_v40 = vadd.f32 %v2599_v8, %v2598_v33  ;;  %v1426_v11 = vadd.f32 %v2597_v3, %v3851_v54 }
 0x1cb   : > { %v3863_v61 = vadd.f32 %v2688_v32, %v1397_v50 }
 0x1cc   : > { %v1429_v47 = vadd.f32 %v2600_v40, %v3851_v54 }
 0x1cd   : > { %v2689_v12 = vpop.f32.mrb[24].mxu1 }
 0x1ce   : > { %v2601_v0 = vpop.f32.mrb[24].mxu0  ;;  %v2690_v53 = vpop.f32.mrb[25].mxu1 }
 0x1cf   : > { %v2691_v42 = vadd.f32 %v2690_v53, %v2689_v12  ;;  %v2602_v46 = vpop.f32.mrb[25].mxu0  ;;  %v2692_v4 = vpop.f32.mrb[26].mxu1 }
 0x1d0   : > { %v2603_v62 = vadd.f32 %v2602_v46, %v2601_v0  ;;  %v2604_v44 = vpop.f32.mrb[26].mxu0  ;;  %v2693_v6 = vpop.f32.mrb[27].mxu1 }
 0x1d1   : > { %v2694_v2 = vadd.f32 %v2693_v6, %v2692_v4  ;;  %v2605_v15 = vpop.f32.mrb[27].mxu0  ;;  %v3867_v39 = vadd.f32 %v2691_v42, %v1402_v58 }
 0x1d2   : > { %v2606_v57 = vadd.f32 %v2605_v15, %v2604_v44  ;;  %v1434_v3 = vadd.f32 %v2603_v62, %v3851_v54 }
 0x1d3   : > { %v3869_v5 = vadd.f32 %v2694_v2, %v1405_v25 }
 0x1d5   : > { %v2695_v26 = vpop.f32.mrb[28].mxu1 }
 0x1d6   : > { %v2607_v14 = vpop.f32.mrb[28].mxu0  ;;  %v2696_v23 = vpop.f32.mrb[29].mxu1 }
 0x1d7   : > { %v2697_v16 = vadd.f32 %v2696_v23, %v2695_v26  ;;  %v2608_v56 = vpop.f32.mrb[29].mxu0  ;;  %v2698_v13 = vpop.f32.mrb[30].mxu1 }
 0x1d8   : > { %v2609_v24 = vadd.f32 %v2608_v56, %v2607_v14  ;;  %v2610_v22 = vpop.f32.mrb[30].mxu0  ;;  %v2699_v37 = vpop.f32.mrb[31].mxu1 }
 0x1d9   : > { %v2700_v59 = vadd.f32 %v2699_v37, %v2698_v13  ;;  %v2611_v63 = vpop.f32.mrb[31].mxu0  ;;  %v3873_v21 = vadd.f32 %v2697_v16, %v1410_v17 }
 0x1da   : > { %v2612_v45 = vadd.f32 %v2611_v63, %v2610_v22  ;;  %v1437_v63 = vadd.f32 %v2606_v57, %v3851_v54 }
 0x1db   : > { %v3875_v28 = vadd.f32 %v2700_v59, %v1413_v31 }
 0x1dd   : > { %v2701_v30 = vpop.f32.mrb[32].mxu1 }
 0x1de   : > { %v2613_v18 = vpop.f32.mrb[32].mxu0  ;;  %v2702_v48 = vpop.f32.mrb[33].mxu1 }
 0x1df   : > { %v2703_v36 = vadd.f32 %v2702_v48, %v2701_v30  ;;  %v2614_v10 = vpop.f32.mrb[33].mxu0  ;;  %v2704_v41 = vpop.f32.mrb[34].mxu1 }
 0x1e0   : > { %v2615_v20 = vadd.f32 %v2614_v10, %v2613_v18  ;;  %v2616_v7 = vpop.f32.mrb[34].mxu0  ;;  %v2705_v33 = vpop.f32.mrb[35].mxu1 }
 0x1e1   : > { %v2706_v55 = vadd.f32 %v2705_v33, %v2704_v41  ;;  %v2617_v50 = vpop.f32.mrb[35].mxu0  ;;  %v3879_v32 = vadd.f32 %v2703_v36, %v1418_v19 }
 0x1e2   : > { %v2618_v8 = vadd.f32 %v2617_v50, %v2616_v7  ;;  %v1442_v7 = vadd.f32 %v2609_v24, %v3851_v54  ;;  %v1450_v24 = vadd.f32 %v2615_v20, %v3851_v54 }
 0x1e3   : > { %v3881_v12 = vadd.f32 %v2706_v55, %v1421_v35 }
 0x1e5   : > { %v2707_v0 = vpop.f32.mrb[36].mxu1 }
 0x1e6   : > { %v2619_v53 = vpop.f32.mrb[36].mxu0  ;;  %v2708_v58 = vpop.f32.mrb[37].mxu1 }
 0x1e7   : > { %v2709_v42 = vadd.f32 %v2708_v58, %v2707_v0  ;;  %v2620_v46 = vpop.f32.mrb[37].mxu0  ;;  %v2710_v4 = vpop.f32.mrb[38].mxu1 }
 0x1e8   : > { %v2621_v44 = vadd.f32 %v2620_v46, %v2619_v53  ;;  %v2622_v6 = vpop.f32.mrb[38].mxu0  ;;  %v2711_v25 = vpop.f32.mrb[39].mxu1  ;;  %v1445_v53 = vadd.f32 %v2612_v45, %v3851_v54 }
 0x1e9   : > { %v2712_v2 = vadd.f32 %v2711_v25, %v2710_v4  ;;  %v2623_v15 = vpop.f32.mrb[39].mxu0  ;;  %v3885_v26 = vadd.f32 %v2709_v42, %v1426_v11 }
 0x1ea   : > { %v3887_v14 = vadd.f32 %v2623_v15, %v2622_v6 }
 0x1eb   : > { %v3889_v23 = vadd.f32 %v2712_v2, %v1429_v47 }
 0x1ed   : > { %v2713_v17 = vpop.f32.mrb[40].mxu1 }
 0x1ee   : > { %v2625_v16 = vpop.f32.mrb[40].mxu0  ;;  %v2714_v56 = vpop.f32.mrb[41].mxu1 }
 0x1ef   : > { %v2715_v13 = vadd.f32 %v2714_v56, %v2713_v17  ;;  %v2626_v22 = vpop.f32.mrb[41].mxu0  ;;  %v2716_v37 = vpop.f32.mrb[42].mxu1 }
 0x1f0   : > { %v3892_v31 = vadd.f32 %v2626_v22, %v2625_v16  ;;  %v2628_v59 = vpop.f32.mrb[42].mxu0  ;;  %v2717_v40 = vpop.f32.mrb[43].mxu1 }
 0x1f1   : > { %v2718_v30 = vadd.f32 %v2717_v40, %v2716_v37  ;;  %v2629_v18 = vpop.f32.mrb[43].mxu0  ;;  %v3895_v48 = vadd.f32 %v2715_v13, %v1434_v3  ;;  %v1453_v13 = vadd.f32 %v2618_v8, %v3851_v54 }
 0x1f2   : > { %v3897_v19 = vadd.f32 %v2629_v18, %v2628_v59  ;;  %v1458_v18 = vadd.f32 %v2621_v44, %v3851_v54 }
 0x1f3   : > { %v3899_v36 = vadd.f32 %v2718_v30, %v1437_v63 }
 0x1f5   : > { %v2719_v10 = vpop.f32.mrb[44].mxu1 }
 0x1f6   : > { %v2631_v41 = vpop.f32.mrb[44].mxu0  ;;  %v2720_v62 = vpop.f32.mrb[45].mxu1 }
 0x1f7   : > { %v2721_v33 = vadd.f32 %v2720_v62, %v2719_v10  ;;  %v2632_v35 = vpop.f32.mrb[45].mxu0  ;;  %v2722_v55 = vpop.f32.mrb[46].mxu1 }
 0x1f8   : > { %v3902_v50 = vadd.f32 %v2632_v35, %v2631_v41  ;;  %v2634_v0 = vpop.f32.mrb[46].mxu0  ;;  %v2723_v57 = vpop.f32.mrb[47].mxu1 }
 0x1f9   : > { %v2724_v58 = vadd.f32 %v2723_v57, %v2722_v55  ;;  %v2635_v11 = vpop.f32.mrb[47].mxu0  ;;  %v1603_v42 = vadd.f32 %v2721_v33, %v1442_v7 }
 0x1fa   : > { %v3905_v46 = vadd.f32 %v2635_v11, %v2634_v0 }
 0x1fb   : > { %v3907_v4 = vadd.f32 %v2724_v58, %v1445_v53 }
 0x1fd   : > { %v2725_v6 = vpop.f32.mrb[48].mxu1 }
 0x1fe   : > { %v2726_v25 = vpop.f32.mrb[49].mxu1  ;;  %v2803_v47 = vpop.f32.mrb[48].mxu0 }
 0x1ff   : > { %v2727_v2 = vadd.f32 %v2726_v25, %v2725_v6  ;;  %v3911_v15 = vadd.f32 %v2803_v47, %v3861_v34  ;;  %v2728_v17 = vpop.f32.mrb[50].mxu1  ;;  %v1707_v16 = vpop.f32.mrb[49].mxu0 }
 0x200   : > { %v3914_v45 = vadd.f32 %v1707_v16, %v3855_v51  ;;  %v2729_v56 = vpop.f32.mrb[51].mxu1  ;;  %v2804_v3 = vpop.f32.mrb[50].mxu0 }
 0x201   : > { %v2730_v22 = vadd.f32 %v2729_v56, %v2728_v17  ;;  %v3918_v37 = vadd.f32 %v2804_v3, %v3863_v61  ;;  %v1710_v59 = vpop.f32.mrb[51].mxu0  ;;  %v3920_v40 = vadd.f32 %v2727_v2, %v1450_v24 }
 0x202   : > { %v3923_v20 = vadd.f32 %v1710_v59, %v3857_v43  ;;  %v1461_v43 = vadd.f32 %v3887_v14, %v3851_v54 }
 0x203   : > { %v3925_v34 = vadd.f32 %v2730_v22, %v1453_v13 }
 0x205   : > { %v2731_v63 = vpop.f32.mrb[52].mxu1 }
 0x206   : > { %v2732_v30 = vpop.f32.mrb[53].mxu1  ;;  %v2807_v51 = vpop.f32.mrb[52].mxu0 }
 0x207   : > { %v2733_v10 = vadd.f32 %v2732_v30, %v2731_v63  ;;  %v3929_v8 = vadd.f32 %v2807_v51, %v3873_v21  ;;  %v2734_v41 = vpop.f32.mrb[54].mxu1  ;;  %v1723_v61 = vpop.f32.mrb[53].mxu0 }
 0x208   : > { %v3932_v62 = vadd.f32 %v1723_v61, %v3867_v39  ;;  %v2735_v7 = vpop.f32.mrb[55].mxu1  ;;  %v2808_v33 = vpop.f32.mrb[54].mxu0  ;;  %v1466_v39 = vadd.f32 %v3892_v31, %v3851_v54 }
 0x209   : > { %v2736_v35 = vadd.f32 %v2735_v7, %v2734_v41  ;;  %v3937_v55 = vadd.f32 %v2808_v33, %v3875_v28  ;;  %v1726_v0 = vpop.f32.mrb[55].mxu0  ;;  %v1619_v44 = vadd.f32 %v2733_v10, %v1458_v18 }
 0x20a   : > { %v3940_v57 = vadd.f32 %v1726_v0, %v3869_v5  ;;  %v1469_v5 = vadd.f32 %v3897_v19, %v3851_v54 }
 0x20b   : > { %v1622_v21 = vadd.f32 %v2736_v35, %v1461_v43 }
 0x20d   : > { %v2737_v53 = vpop.f32.mrb[56].mxu1 }
 0x20e   : > { %v2738_v58 = vpop.f32.mrb[57].mxu1  ;;  %v2811_v11 = vpop.f32.mrb[56].mxu0 }
 0x20f   : > { %v2739_v6 = vadd.f32 %v2738_v58, %v2737_v53  ;;  %v3945_v25 = vadd.f32 %v2811_v11, %v3885_v26  ;;  %v2740_v14 = vpop.f32.mrb[58].mxu1  ;;  %v1739_v47 = vpop.f32.mrb[57].mxu0 }
 0x210   : > { %v3948_v28 = vadd.f32 %v1739_v47, %v3879_v32  ;;  %v2741_v24 = vpop.f32.mrb[59].mxu1  ;;  %v2812_v2 = vpop.f32.mrb[58].mxu0  ;;  %v1474_v32 = vadd.f32 %v3902_v50, %v3851_v54 }
 0x211   : > { %v2742_v17 = vadd.f32 %v2741_v24, %v2740_v14  ;;  %v3953_v16 = vadd.f32 %v2812_v2, %v3889_v23  ;;  %v1742_v56 = vpop.f32.mrb[59].mxu0  ;;  %v1627_v31 = vadd.f32 %v2739_v6, %v1466_v39 }
 0x212   : > { %v3956_v3 = vadd.f32 %v1742_v56, %v3881_v12  ;;  %v1477_v12 = vadd.f32 %v3905_v46, %v3851_v54 }
 0x213   : > { %v1630_v26 = vadd.f32 %v2742_v17, %v1469_v5 }
 0x215   : > { %v2743_v13 = vpop.f32.mrb[60].mxu1 }
 0x216   : > { %v2744_v22 = vpop.f32.mrb[61].mxu1  ;;  %v2815_v59 = vpop.f32.mrb[60].mxu0 }
 0x217   : > { %v2745_v63 = vadd.f32 %v2744_v22, %v2743_v13  ;;  %v3960_v30 = vadd.f32 %v2815_v59, %v1603_v42  ;;  %v2746_v19 = vpop.f32.mrb[62].mxu1  ;;  %v1755_v51 = vpop.f32.mrb[61].mxu0 }
 0x218   : > { %v3963_v23 = vadd.f32 %v1755_v51, %v3895_v48  ;;  %v2747_v18 = vpop.f32.mrb[63].mxu1  ;;  %v2816_v10 = vpop.f32.mrb[62].mxu0  ;;  %v1482_v48 = vadd.f32 %v3830_v9, %v3851_v54 }
 0x219   : > { %v2748_v41 = vadd.f32 %v2747_v18, %v2746_v19  ;;  %v3968_v61 = vadd.f32 %v2816_v10, %v3907_v4  ;;  %v1758_v7 = vpop.f32.mrb[63].mxu0  ;;  %v1635_v33 = vadd.f32 %v2745_v63, %v1474_v32 }
 0x21a   : > { %v3971_v50 = vadd.f32 %v1758_v7, %v3899_v36  ;;  %v1485_v36 = vadd.f32 %v3832_v38, %v3851_v54 }
 0x21b   : > { %v1638_v42 = vadd.f32 %v2748_v41, %v1477_v12 }
 0x21d   : > { %v2749_v43 = vpop.f32.mrb[64].mxu1 }
 0x21e   : > { %v2750_v35 = vpop.f32.mrb[65].mxu1  ;;  %v2819_v0 = vpop.f32.mrb[64].mxu0 }
 0x21f   : > { %v2751_v53 = vadd.f32 %v2750_v35, %v2749_v43  ;;  %v3975_v58 = vadd.f32 %v2819_v0, %v1619_v44  ;;  %v2752_v46 = vpop.f32.mrb[66].mxu1  ;;  %v1771_v11 = vpop.f32.mrb[65].mxu0 }
 0x220   : > { %v3978_v4 = vadd.f32 %v1771_v11, %v3920_v40  ;;  %v2753_v39 = vpop.f32.mrb[67].mxu1  ;;  %v2820_v6 = vpop.f32.mrb[66].mxu0  ;;  %v1490_v40 = vadd.f32 %v3834_v49, %v3851_v54 }
 0x221   : > { %v2754_v14 = vadd.f32 %v2753_v39, %v2752_v46  ;;  %v3982_v47 = vadd.f32 %v2820_v6, %v1622_v21  ;;  %v1774_v24 = vpop.f32.mrb[67].mxu0  ;;  %v1643_v2 = vadd.f32 %v2751_v53, %v1482_v48 }
 0x222   : > { %v3985_v9 = vadd.f32 %v1774_v24, %v3925_v34  ;;  %v1493_v34 = vadd.f32 %v3836_v29, %v3851_v54 }
 0x223   : > { %v1646_v44 = vadd.f32 %v2754_v14, %v1485_v36 }
 0x225   : > { %v2755_v5 = vpop.f32.mrb[68].mxu1 }
 0x226   : > { %v2756_v17 = vpop.f32.mrb[69].mxu1  ;;  %v2823_v56 = vpop.f32.mrb[68].mxu0 }
 0x227   : > { %v2757_v13 = vadd.f32 %v2756_v17, %v2755_v5  ;;  %v3989_v22 = vadd.f32 %v2823_v56, %v1635_v33  ;;  %v2758_v59 = vpop.f32.mrb[70].mxu1  ;;  %v1787_v38 = vpop.f32.mrb[69].mxu0 }
 0x228   : > { %v3991_v32 = vadd.f32 %v1787_v38, %v1627_v31  ;;  %v2759_v21 = vpop.f32.mrb[71].mxu1  ;;  %v2824_v63 = vpop.f32.mrb[70].mxu0  ;;  %v1498_v31 = vadd.f32 %v3838_v60, %v3851_v54  ;;  %v1509_v38 = vadd.f32 %v3844_v52, %v3851_v54  ;;  %v1842_v52 = vmax.f32 (!%p2540_p1), %v3918_v37, 0.0 }
 0x229   : > { %v2760_v19 = vadd.f32 %v2759_v21, %v2758_v59  ;;  %v3995_v51 = vadd.f32 %v2824_v63, %v1638_v42  ;;  %v1790_v18 = vpop.f32.mrb[71].mxu0  ;;  %v1651_v10 = vadd.f32 %v2757_v13, %v1490_v40 }
 0x22a   : > { %v3997_v12 = vadd.f32 %v1790_v18, %v1630_v26  ;;  %v1501_v26 = vadd.f32 %v3840_v27, %v3851_v54  ;;  %1875 = vst.msk [vmem:[#allocation2 + $0x39] sm:$0xff] (!%p2540_p1), %vm839_vm4, %v1842_v52 }
 0x22b   : > { %v1654_v49 = vadd.f32 %v2760_v19, %v1493_v34 }
 0x22d   : > { %v2761_v41 = vpop.f32.mrb[72].mxu1 }
 0x22e   : > { %v2762_v7 = vpop.f32.mrb[73].mxu1  ;;  %v2827_v33 = vpop.f32.mrb[72].mxu0 }
 0x22f   : > { %v2763_v43 = vadd.f32 %v2762_v7, %v2761_v41  ;;  %v4001_v35 = vadd.f32 %v2827_v33, %v1651_v10  ;;  %v2764_v0 = vpop.f32.mrb[74].mxu1  ;;  %v1803_v48 = vpop.f32.mrb[73].mxu0  ;;  %v1841_v41 = vmax.f32 (!%p2540_p1), %v3911_v15, 0.0  ;;  %v1844_v7 = vmax.f32 (!%p2540_p1), %v3940_v57, 0.0 }
 0x230   : > { %v4003_v29 = vadd.f32 %v1803_v48, %v1643_v2  ;;  %v2765_v42 = vpop.f32.mrb[75].mxu1  ;;  %v2828_v53 = vpop.f32.mrb[74].mxu0  ;;  %v1506_v2 = vadd.f32 %v3842_v1, %v3851_v54  ;;  %v1839_v1 = vmax.f32 (!%p2540_p1), %v3914_v45, 0.0  ;;  %v1843_v54 = vmax.f32 (!%p2540_p1), %v3932_v62, 0.0 }
 0x231   : > { %v2766_v46 = vadd.f32 %v2765_v42, %v2764_v0  ;;  %v4007_v11 = vadd.f32 %v2828_v53, %v1654_v49  ;;  %v1806_v39 = vpop.f32.mrb[75].mxu0  ;;  %v1659_v6 = vadd.f32 %v2763_v43, %v1498_v31  ;;  %v1840_v49 = vmax.f32 (!%p2540_p1), %v3923_v20, 0.0  ;;  %1874 = vst.msk [vmem:[#allocation2 + $0x31] sm:$0xff] (!%p2540_p1), %vm839_vm4, %v1841_v41  ;;  %1877 = vst.msk [vmem:[#allocation2 + $0x51] sm:$0xff] (!%p2540_p1), %vm839_vm4, %v1844_v7 }
 0x232   : > { %v4009_v36 = vadd.f32 %v1806_v39, %v1646_v44  ;;  %v1845_v33 = vmax.f32 (!%p2540_p1), %v3929_v8, 0.0  ;;  %v1846_v31 = vmax.f32 (!%p2540_p1), %v3937_v55, 0.0  ;;  %1872 = vst.msk [vmem:[#allocation2 + $0x19] sm:$0xff] (!%p2540_p1), %vm839_vm4, %v1839_v1  ;;  %v1847_v43 = vmax.f32 (!%p2540_p1), %v3948_v28, 0.0  ;;  %1876 = vst.msk [vmem:[#allocation2 + $0x49] sm:$0xff] (!%p2540_p1), %vm839_vm4, %v1843_v54 }
 0x233   : > { %v1662_v60 = vadd.f32 %v2766_v46, %v1501_v26  ;;  %1873 = vst.msk [vmem:[#allocation2 + $0x21] sm:$0xff] (!%p2540_p1), %vm839_vm4, %v1840_v49  ;;  %v1848_v0 = vmax.f32 (!%p2540_p1), %v3956_v3, 0.0  ;;  %v1849_v48 = vmax.f32 (!%p2540_p1), %v3945_v25, 0.0  ;;  %v1850_v42 = vmax.f32 (!%p2540_p1), %v3953_v16, 0.0 }
 0x234   : > { %1878 = vst.msk [vmem:[#allocation2 + $0x61] sm:$0xff] (!%p2540_p1), %vm839_vm4, %v1845_v33  ;;  %1879 = vst.msk [vmem:[#allocation2 + $0x69] sm:$0xff] (!%p2540_p1), %vm839_vm4, %v1846_v31  ;;  %v1851_v53 = vmax.f32 (!%p2540_p1), %v3963_v23, 0.0  ;;  %v1852_v26 = vmax.f32 (!%p2540_p1), %v3971_v50, 0.0  ;;  %v1853_v46 = vmax.f32 (!%p2540_p1), %v3960_v30, 0.0  ;;  %v1854_v39 = vmax.f32 (!%p2540_p1), %v3968_v61, 0.0 }
 0x235   : > { %v2767_v14 = vpop.f32.mrb[76].mxu1  ;;  %1880 = vst.msk [vmem:[#allocation2 + $0x79] sm:$0xff] (!%p2540_p1), %vm839_vm4, %v1847_v43  ;;  %1881 = vst.msk [vmem:[#allocation2 + $0x81] sm:$0xff] (!%p2540_p1), %vm839_vm4, %v1848_v0 }
 0x236   : > { %v2768_v24 = vpop.f32.mrb[77].mxu1  ;;  %v2831_v5 = vpop.f32.mrb[76].mxu0  ;;  %1882 = vst.msk [vmem:[#allocation2 + $0x91] sm:$0xff] (!%p2540_p1), %vm839_vm4, %v1849_v48  ;;  %1883 = vst.msk [vmem:[#allocation2 + $0x99] sm:$0xff] (!%p2540_p1), %vm839_vm4, %v1850_v42 }
 0x237   : > { %v2769_v17 = vadd.f32 %v2768_v24, %v2767_v14  ;;  %v2770_v56 = vpop.f32.mrb[78].mxu1  ;;  %v1819_v40 = vpop.f32.mrb[77].mxu0  ;;  %1838 = sbr.rel (%p2540_p1) target bundleno = 578 (0x242), region = 40  ;;  %v1857_v14 = vmax.f32 (!%p2540_p1), %v3975_v58, 0.0  ;;  %v1858_v24 = vmax.f32 (!%p2540_p1), %v3982_v47, 0.0  ;;  %1884 = vst.msk [vmem:[#allocation2 + $0xa9] sm:$0xff] (!%p2540_p1), %vm839_vm4, %v1851_v53 }
 0x238   : > { %v4013_v13 = vadd.f32 %v1819_v40, %v1659_v6  ;;  %v2771_v27 = vpop.f32.mrb[79].mxu1  ;;  %v2832_v59 = vpop.f32.mrb[78].mxu0  ;;  %v1855_v6 = vmax.f32 (!%p2540_p1), %v3978_v4, 0.0  ;;  %1885 = vst.msk [vmem:[#allocation2 + $0xb1] sm:$0xff] (!%p2540_p1), %vm839_vm4, %v1852_v26  ;;  %1886 = vst.msk [vmem:[#allocation2 + $0xc1] sm:$0xff] (!%p2540_p1), %vm839_vm4, %v1853_v46  ;;  %v1863_v40 = vmax.f32 (!%p2540_p1), %v4003_v29, 0.0 }
 0x239   : > { %v1667_v21 = vadd.f32 %v2769_v17, %v1506_v2  ;;  %v2772_v44 = vadd.f32 %v2771_v27, %v2770_v56  ;;  %v1822_v63 = vpop.f32.mrb[79].mxu0  ;;  %1887 = vst.msk [vmem:[#allocation2 + $0xc9] sm:$0xff] (!%p2540_p1), %vm839_vm4, %v1854_v39  ;;  %v1860_v2 = vmax.f32 (!%p2540_p1), %v3997_v12, 0.0  ;;  %v1861_v17 = vmax.f32 (!%p2540_p1), %v3989_v22, 0.0  ;;  %1890 = vst.msk [vmem:[#allocation2 + $0xf1] sm:$0xff] (!%p2540_p1), %vm839_vm4, %v1857_v14 }
 0x23a   : > { %v4017_v34 = vadd.f32 %v1822_v63, %v1662_v60  ;;  %v1856_v60 = vmax.f32 (!%p2540_p1), %v3985_v9, 0.0  ;;  %v1862_v56 = vmax.f32 (!%p2540_p1), %v3995_v51, 0.0  ;;  %1888 = vst.msk [vmem:[#allocation2 + $0xd9] sm:$0xff] (!%p2540_p1), %vm839_vm4, %v1855_v6  ;;  %1891 = vst.msk [vmem:[#allocation2 + $0xf9] sm:$0xff] (!%p2540_p1), %vm839_vm4, %v1858_v24  ;;  %v1864_v27 = vmax.f32 (!%p2540_p1), %v4009_v36, 0.0 }
 0x23b   : > { %v4019_v19 = vadd.f32 %v2831_v5, %v1667_v21  ;;  %v1670_v18 = vadd.f32 %v2772_v44, %v1509_v38  ;;  %v1859_v5 = vmax.f32 (!%p2540_p1), %v3991_v32, 0.0  ;;  %v1866_v38 = vmax.f32 (!%p2540_p1), %v4007_v11, 0.0  ;;  %1893 = vst.msk [vmem:[#allocation2 + $0x111] sm:$0xff] (!%p2540_p1), %vm839_vm4, %v1860_v2  ;;  %1894 = vst.msk [vmem:[#allocation2 + $0x121] sm:$0xff] (!%p2540_p1), %vm839_vm4, %v1861_v17 }
 0x23c   : > { %1889 = vst.msk [vmem:[#allocation2 + $0xe1] sm:$0xff] (!%p2540_p1), %vm839_vm4, %v1856_v60  ;;  %1895 = vst.msk [vmem:[#allocation2 + $0x129] sm:$0xff] (!%p2540_p1), %vm839_vm4, %v1862_v56  ;;  %v1867_v21 = vmax.f32 (!%p2540_p1), %v4013_v13, 0.0  ;;  %v1868_v44 = vmax.f32 (!%p2540_p1), %v4017_v34, 0.0 }
 0x23d   : > { %v4021_v10 = vadd.f32 %v2832_v59, %v1670_v18  ;;  %v1865_v59 = vmax.f32 (!%p2540_p1), %v4001_v35, 0.0  ;;  %1892 = vst.msk [vmem:[#allocation2 + $0x109] sm:$0xff] (!%p2540_p1), %vm839_vm4, %v1859_v5  ;;  %v1869_v63 = vmax.f32 (!%p2540_p1), %v4019_v19, 0.0  ;;  %1896 = vst.msk [vmem:[#allocation2 + $0x139] sm:$0xff] (!%p2540_p1), %vm839_vm4, %v1863_v40 }
 0x23e   : > { %1897 = vst.msk [vmem:[#allocation2 + $0x141] sm:$0xff] %vm839_vm4, %v1864_v27  ;;  %1899 = vst.msk [vmem:[#allocation2 + $0x159] sm:$0xff] %vm839_vm4, %v1866_v38 }
 0x23f   : > { %v1870_v18 = vmax.f32 %v4021_v10, 0.0  ;;  %1898 = vst.msk [vmem:[#allocation2 + $0x151] sm:$0xff] %vm839_vm4, %v1865_v59  ;;  %1900 = vst.msk [vmem:[#allocation2 + $0x169] sm:$0xff] %vm839_vm4, %v1867_v21 }
 0x240   : > { %1901 = vst.msk [vmem:[#allocation2 + $0x171] sm:$0xff] %vm839_vm4, %v1868_v44  ;;  %1902 = vst.msk [vmem:[#allocation2 + $0x181] sm:$0xff] %vm839_vm4, %v1869_v63 }
 0x241   : > { %1903 = vst.msk [vmem:[#allocation2 + $0x189] sm:$0xff] %vm839_vm4, %v1870_v18 }
 0x242 PF: > { %p2541_p2 = scmp.ne.s32.totalorder %s3039_s15, 19 }
 0x243   : > { %v1913_v1 = vsel (!%p2541_p2), %vm839_vm4, %v3911_v15, 0.0  ;;  %v1907_v49 = vsel (!%p2541_p2), %vm839_vm4, %v3914_v45, 0.0  ;;  %v1916_v41 = vsel (!%p2541_p2), %vm839_vm4, %v3918_v37, 0.0  ;;  %v1910_v52 = vsel (!%p2541_p2), %vm839_vm4, %v3923_v20, 0.0  ;;  %v2006_v33 = vld [vmem:[%s3163_s9 + $0x18] sm:$0xff] (!%p2541_p2)  ;;  %v2005_v31 = vld [vmem:[%s3163_s9 + $0x10] sm:$0xff] (!%p2541_p2) }
 0x244   : > { %1906 = sbr.rel (%p2541_p2) target bundleno = 853 (0x355), region = 44  ;;  %1914 = vadd.xlane.f32.xlu1 (!%p2541_p2), %v1913_v1  ;;  %1908 = vadd.xlane.f32.xlu0 (!%p2541_p2), %v1907_v49  ;;  %v1922_v54 = vsel (!%p2541_p2), %vm839_vm4, %v3940_v57, 0.0  ;;  %v1919_v7 = vsel (!%p2541_p2), %vm839_vm4, %v3932_v62, 0.0  ;;  %v1928_v15 = vsel (!%p2541_p2), %vm839_vm4, %v3937_v55, 0.0  ;;  %v1925_v45 = vsel (!%p2541_p2), %vm839_vm4, %v3929_v8, 0.0  ;;  %v2020_v43 = vld [vmem:[%s3163_s9 + $0x88] sm:$0xff] (!%p2541_p2) }
 0x245   : > { %v1934_v37 = vsel (!%p2541_p2), %vm839_vm4, %v3956_v3, 0.0  ;;  %v1931_v20 = vsel (!%p2541_p2), %vm839_vm4, %v3948_v28, 0.0  ;;  %v1940_v62 = vsel (!%p2541_p2), %vm839_vm4, %v3953_v16, 0.0  ;;  %v1937_v57 = vsel (!%p2541_p2), %vm839_vm4, %v3945_v25, 0.0  ;;  %v2019_v0 = vld [vmem:[%s3163_s9 + $0x80] sm:$0xff] (!%p2541_p2)  ;;  %v2022_v53 = vld [vmem:[%s3163_s9 + $0x98] sm:$0xff] (!%p2541_p2) }
 0x246   : > { %v1946_v8 = vsel (!%p2541_p2), %vm839_vm4, %v3971_v50, 0.0  ;;  %v1943_v55 = vsel (!%p2541_p2), %vm839_vm4, %v3963_v23, 0.0  ;;  %v1952_v28 = vsel (!%p2541_p2), %vm839_vm4, %v3968_v61, 0.0  ;;  %v1949_v16 = vsel (!%p2541_p2), %vm839_vm4, %v3960_v30, 0.0  ;;  %v2021_v26 = vld [vmem:[%s3163_s9 + $0x90] sm:$0xff] (!%p2541_p2)  ;;  %v2008_v6 = vld [vmem:[%s3163_s9 + $0x28] sm:$0xff] (!%p2541_p2) }
 0x247   : > { %v1958_v25 = vsel (!%p2541_p2), %vm839_vm4, %v3985_v9, 0.0  ;;  %v1955_v3 = vsel (!%p2541_p2), %vm839_vm4, %v3978_v4, 0.0  ;;  %v1964_v23 = vsel (!%p2541_p2), %vm839_vm4, %v3982_v47, 0.0  ;;  %v1961_v61 = vsel (!%p2541_p2), %vm839_vm4, %v3975_v58, 0.0  ;;  %v2004_v4 = vld [vmem:[%s3163_s9 + $0x8] sm:$0xff] (!%p2541_p2)  ;;  %v2003_v9 = vld [vmem:[%s3163_s9] sm:$0xff] (!%p2541_p2) }
 0x248   : > { %1917 = vadd.xlane.f32.xlu1 (!%p2541_p2), %v1916_v41  ;;  %1911 = vadd.xlane.f32.xlu0 (!%p2541_p2), %v1910_v52  ;;  %v1970_v30 = vsel (!%p2541_p2), %vm839_vm4, %v3997_v12, 0.0  ;;  %v1967_v50 = vsel (!%p2541_p2), %vm839_vm4, %v3991_v32, 0.0  ;;  %v2038_v47 = vsel (!%p2541_p2), %vm839_vm4, %v2004_v4, 0.0  ;;  %v2035_v58 = vsel (!%p2541_p2), %vm839_vm4, %v2003_v9, 0.0  ;;  %v2007_v60 = vld [vmem:[%s3163_s9 + $0x20] sm:$0xff] (!%p2541_p2)  ;;  %v2024_v5 = vld [vmem:[%s3163_s9 + $0xa8] sm:$0xff] (!%p2541_p2) }
 0x249   : > { %v2044_v12 = vsel (!%p2541_p2), %vm839_vm4, %v2006_v33, 0.0  ;;  %v2041_v32 = vsel (!%p2541_p2), %vm839_vm4, %v2005_v31, 0.0  ;;  %v2086_v48 = vsel (!%p2541_p2), %vm839_vm4, %v2020_v43, 0.0  ;;  %v2083_v42 = vsel (!%p2541_p2), %vm839_vm4, %v2019_v0, 0.0  ;;  %v2023_v2 = vld [vmem:[%s3163_s9 + $0xa0] sm:$0xff] (!%p2541_p2)  ;;  %v2010_v59 = vld [vmem:[%s3163_s9 + $0x38] sm:$0xff] (!%p2541_p2) }
 0x24a   : > { %v2092_v46 = vsel (!%p2541_p2), %vm839_vm4, %v2022_v53, 0.0  ;;  %v2089_v39 = vsel (!%p2541_p2), %vm839_vm4, %v2021_v26, 0.0  ;;  %v2050_v14 = vsel (!%p2541_p2), %vm839_vm4, %v2008_v6, 0.0  ;;  %v2047_v24 = vsel (!%p2541_p2), %vm839_vm4, %v2007_v60, 0.0  ;;  %v2009_v38 = vld [vmem:[%s3163_s9 + $0x30] sm:$0xff] (!%p2541_p2)  ;;  %v2026_v63 = vld [vmem:[%s3163_s9 + $0xb8] sm:$0xff] (!%p2541_p2) }
 0x24b   : > { %v2098_v17 = vsel %vm839_vm4, %v2024_v5, 0.0  ;;  %v2095_v56 = vsel %vm839_vm4, %v2023_v2, 0.0  ;;  %v1976_v40 = vsel %vm839_vm4, %v3995_v51, 0.0  ;;  %v1973_v27 = vsel %vm839_vm4, %v3989_v22, 0.0  ;;  %v2025_v18 = vld [vmem:[%s3163_s9 + $0xb0] sm:$0xff]  ;;  %v2012_v41 = vld [vmem:[%s3163_s9 + $0x48] sm:$0xff] }
 0x24c   : > { %1923 = vadd.xlane.f32.xlu1 %v1922_v54  ;;  %1920 = vadd.xlane.f32.xlu0 %v1919_v7  ;;  %v2056_v21 = vsel %vm839_vm4, %v2010_v59, 0.0  ;;  %v2053_v44 = vsel %vm839_vm4, %v2009_v38, 0.0  ;;  %v2104_v51 = vsel %vm839_vm4, %v2026_v63, 0.0  ;;  %v2101_v22 = vsel %vm839_vm4, %v2025_v18, 0.0  ;;  %v2011_v52 = vld [vmem:[%s3163_s9 + $0x40] sm:$0xff]  ;;  %v2032_v4 = vld [vmem:[%s3163_s9 + $0xe8] sm:$0xff] }
 0x24d   : > { %v1982_v1 = vsel %vm839_vm4, %v4009_v36, 0.0  ;;  %v1979_v49 = vsel %vm839_vm4, %v4003_v29, 0.0  ;;  %v2062_v54 = vsel %vm839_vm4, %v2012_v41, 0.0  ;;  %v2059_v7 = vsel %vm839_vm4, %v2011_v52, 0.0  ;;  %v2031_v9 = vld [vmem:[%s3163_s9 + $0xe0] sm:$0xff]  ;;  %v2018_v33 = vld [vmem:[%s3163_s9 + $0x78] sm:$0xff] }
 0x24e   : > { %v2017_v31 = vld [vmem:[%s3163_s9 + $0x70] sm:$0xff]  ;;  %v2034_v43 = vld [vmem:[%s3163_s9 + $0xf8] sm:$0xff]  ;;  %v2195_v59 = vlaneseq  ;;  %vm2206_vm5 = vcmask 130112   ;;  %vm2343_vm6 = vcmask 1041409   ;;  %vm2345_vm7 = vcmask 1042434  }
 0x24f   : > { %v2033_v0 = vld [vmem:[%s3163_s9 + $0xf0] sm:$0xff]  ;;  %vm2347_vm8 = vcmask 1043459   ;;  %vm2349_vm9 = vcmask 1044484   ;;  %vm2351_vm10 = vcmask 1045509   ;;  %vm2353_vm11 = vcmask 1046534  }
 0x250   : > { %1929 = vadd.xlane.f32.xlu1 %v1928_v15  ;;  %1926 = vadd.xlane.f32.xlu0 %v1925_v45  ;;  %v2028_v15 = vld [vmem:[%s3163_s9 + $0xc8] sm:$0xff]  ;;  %v2027_v45 = vld [vmem:[%s3163_s9 + $0xc0] sm:$0xff]  ;;  %vm2355_vm12 = vcmask 1047559   ;;  %vm2366_vm13 = vcmask 130048  }
 0x251   : > { %v2110_v36 = vsel %vm839_vm4, %v2028_v15, 0.0  ;;  %v2107_v29 = vsel %vm839_vm4, %v2027_v45, 0.0 }
 0x254   : > { %1935 = vadd.xlane.f32.xlu1 %v1934_v37  ;;  %1932 = vadd.xlane.f32.xlu0 %v1931_v20  ;;  %v1988_v37 = vsel %vm839_vm4, %v4007_v11, 0.0  ;;  %v1985_v20 = vsel %vm839_vm4, %v4001_v35, 0.0 }
 0x258   : > { %1941 = vadd.xlane.f32.xlu1 %v1940_v62  ;;  %1938 = vadd.xlane.f32.xlu0 %v1937_v57  ;;  %v2014_v62 = vld [vmem:[%s3163_s9 + $0x58] sm:$0xff]  ;;  %v2013_v57 = vld [vmem:[%s3163_s9 + $0x50] sm:$0xff] }
 0x25c   : > { %1947 = vadd.xlane.f32.xlu1 %v1946_v8  ;;  %1944 = vadd.xlane.f32.xlu0 %v1943_v55  ;;  %v2068_v8 = vsel %vm839_vm4, %v2014_v62, 0.0  ;;  %v2065_v55 = vsel %vm839_vm4, %v2013_v57, 0.0 }
 0x260   : > { %1953 = vadd.xlane.f32.xlu1 %v1952_v28  ;;  %1950 = vadd.xlane.f32.xlu0 %v1949_v16  ;;  %v2030_v28 = vld [vmem:[%s3163_s9 + $0xd8] sm:$0xff]  ;;  %v2029_v16 = vld [vmem:[%s3163_s9 + $0xd0] sm:$0xff] }
 0x261   : > { %v2116_v11 = vsel %vm839_vm4, %v2030_v28, 0.0  ;;  %v2113_v35 = vsel %vm839_vm4, %v2029_v16, 0.0 }
 0x264   : > { %1959 = vadd.xlane.f32.xlu1 %v1958_v25  ;;  %1956 = vadd.xlane.f32.xlu0 %v1955_v3  ;;  %v1994_v25 = vsel %vm839_vm4, %v4017_v34, 0.0  ;;  %v1991_v3 = vsel %vm839_vm4, %v4013_v13, 0.0  ;;  %v2122_v34 = vsel %vm839_vm4, %v2032_v4, 0.0  ;;  %v2119_v13 = vsel %vm839_vm4, %v2031_v9, 0.0 }
 0x268   : > { %1965 = vadd.xlane.f32.xlu1 %v1964_v23  ;;  %1962 = vadd.xlane.f32.xlu0 %v1961_v61  ;;  %v2016_v23 = vld [vmem:[%s3163_s9 + $0x68] sm:$0xff]  ;;  %v2015_v61 = vld [vmem:[%s3163_s9 + $0x60] sm:$0xff] }
 0x26c   : > { %1971 = vadd.xlane.f32.xlu1 %v1970_v30  ;;  %1968 = vadd.xlane.f32.xlu0 %v1967_v50  ;;  %v2074_v30 = vsel %vm839_vm4, %v2016_v23, 0.0  ;;  %v2071_v50 = vsel %vm839_vm4, %v2015_v61, 0.0 }
 0x270   : > { %2039 = vadd.xlane.f32.xlu1 %v2038_v47  ;;  %2036 = vadd.xlane.f32.xlu0 %v2035_v58  ;;  %v2000_v47 = vsel %vm839_vm4, %v4021_v10, 0.0  ;;  %v1997_v58 = vsel %vm839_vm4, %v4019_v19, 0.0 }
 0x274   : > { %2045 = vadd.xlane.f32.xlu1 %v2044_v12  ;;  %2042 = vadd.xlane.f32.xlu0 %v2041_v32  ;;  %v2080_v12 = vsel %vm839_vm4, %v2018_v33, 0.0  ;;  %v2077_v32 = vsel %vm839_vm4, %v2017_v31, 0.0 }
 0x278   : > { %2087 = vadd.xlane.f32.xlu1 %v2086_v48  ;;  %2084 = vadd.xlane.f32.xlu0 %v2083_v42  ;;  %v2128_v48 = vsel %vm839_vm4, %v2034_v43, 0.0  ;;  %v2125_v42 = vsel %vm839_vm4, %v2033_v0, 0.0 }
 0x27c   : > { %2093 = vadd.xlane.f32.xlu1 %v2092_v46  ;;  %2090 = vadd.xlane.f32.xlu0 %v2089_v39 }
 0x280   : > { %2051 = vadd.xlane.f32.xlu1 %v2050_v14  ;;  %2048 = vadd.xlane.f32.xlu0 %v2047_v24 }
 0x284   : > { %2099 = vadd.xlane.f32.xlu1 %v2098_v17  ;;  %2096 = vadd.xlane.f32.xlu0 %v2095_v56 }
 0x288   : > { %1977 = vadd.xlane.f32.xlu1 %v1976_v40  ;;  %1974 = vadd.xlane.f32.xlu0 %v1973_v27 }
 0x28c   : > { %2057 = vadd.xlane.f32.xlu1 %v2056_v21  ;;  %2054 = vadd.xlane.f32.xlu0 %v2053_v44  ;;  %v2196_v44 = vand.u32 127, %v2195_v59 }
 0x290   : > { %2105 = vadd.xlane.f32.xlu1 %v2104_v51  ;;  %2102 = vadd.xlane.f32.xlu0 %v2101_v22  ;;  %v2198_v51 = vshrl.u32 %v2195_v59, 7  ;;  %v2201_v22 = vadd.s32 4294967288, %v2196_v44 }
 0x292   : > { %v4237_v41 = vsub.s32 %v2201_v22, %v2198_v51  ;;  %v4239_v52 = vsub.s32 %v2196_v44, %v2198_v51 }
 0x294   : > { %1983 = vadd.xlane.f32.xlu1 %v1982_v1  ;;  %1980 = vadd.xlane.f32.xlu0 %v1979_v49 }
 0x298   : > { %2063 = vadd.xlane.f32.xlu1 %v2062_v54  ;;  %2060 = vadd.xlane.f32.xlu0 %v2059_v7 }
 0x29c   : > { %2111 = vadd.xlane.f32.xlu1 %v2110_v36  ;;  %2108 = vadd.xlane.f32.xlu0 %v2107_v29 }
 0x2a0   : > { %1989 = vadd.xlane.f32.xlu1 %v1988_v37  ;;  %1986 = vadd.xlane.f32.xlu0 %v1985_v20 }
 0x2a4   : > { %2069 = vadd.xlane.f32.xlu1 %v2068_v8  ;;  %2066 = vadd.xlane.f32.xlu0 %v2065_v55 }
 0x2a8   : > { %2117 = vadd.xlane.f32.xlu1 %v2116_v11  ;;  %2114 = vadd.xlane.f32.xlu0 %v2113_v35 }
 0x2ac   : > { %1995 = vadd.xlane.f32.xlu1 %v1994_v25  ;;  %1992 = vadd.xlane.f32.xlu0 %v1991_v3 }
 0x2b0   : > { %2075 = vadd.xlane.f32.xlu1 %v2074_v30  ;;  %2072 = vadd.xlane.f32.xlu0 %v2071_v50 }
 0x2b4   : > { %2123 = vadd.xlane.f32.xlu1 %v2122_v34  ;;  %2120 = vadd.xlane.f32.xlu0 %v2119_v13 }
 0x2b8   : > { %2001 = vadd.xlane.f32.xlu1 %v2000_v47  ;;  %1998 = vadd.xlane.f32.xlu0 %v1997_v58 }
 0x2bc   : > { %2081 = vadd.xlane.f32.xlu1 %v2080_v12  ;;  %2078 = vadd.xlane.f32.xlu0 %v2077_v32 }
 0x2c0   : > { %2129 = vadd.xlane.f32.xlu1 %v2128_v48  ;;  %2126 = vadd.xlane.f32.xlu0 %v2125_v42 }
 0x2d1   : > { %v1915_v10 = vpop.xlane.xlu1 %1914  ;;  %v1909_v19 = vpop.xlane.xlu0 %1908 }
 0x2d5   : > { %v1918_v53 = vpop.xlane.xlu1 %1917  ;;  %v1912_v26 = vpop.xlane.xlu0 %1911 }
 0x2d9   : > { %v1924_v46 = vpop.xlane.xlu1 %1923  ;;  %v1921_v39 = vpop.xlane.xlu0 %1920 }
 0x2dd   : > { %v4217_v6 = vpop.xlane.xlu1 %1929  ;;  %v4219_v60 = vpop.xlane.xlu0 %1926 }
 0x2e1   : > { %v4221_v14 = vpop.xlane.xlu1 %1935  ;;  %v4223_v24 = vpop.xlane.xlu0 %1932 }
 0x2e5   : > { %v4225_v5 = vpop.xlane.xlu1 %1941  ;;  %v4227_v2 = vpop.xlane.xlu0 %1938 }
 0x2e9   : > { %v4229_v17 = vpop.xlane.xlu1 %1947  ;;  %v4231_v56 = vpop.xlane.xlu0 %1944 }
 0x2ed   : > { %v4233_v40 = vpop.xlane.xlu1 %1953  ;;  %v4235_v27 = vpop.xlane.xlu0 %1950 }
 0x2f1   : > { %v1960_v38 = vpop.xlane.xlu1 %1959  ;;  %v1957_v21 = vpop.xlane.xlu0 %1956 }
 0x2f5   : > { %v1966_v63 = vpop.xlane.xlu1 %1965  ;;  %v1963_v18 = vpop.xlane.xlu0 %1962 }
 0x2f9   : > { %v1972_v1 = vpop.xlane.xlu1 %1971  ;;  %v1969_v49 = vpop.xlane.xlu0 %1968 }
 0x2fd   : > { %v2040_v54 = vpop.xlane.xlu1 %2039  ;;  %v2037_v7 = vpop.xlane.xlu0 %2036 }
 0x2fe   : > { %v2132_v15 = vadd.f32 %v2040_v54, %v1912_v26  ;;  %v2131_v45 = vadd.f32 %v2037_v7, %v1909_v19 }
 0x300   : > { %v2205_v36 = vrot.slane %v2132_v15, %v4237_v41  ;;  %v2200_v29 = vrot.slane %v2131_v45, %v4239_v52 }
 0x301   : > { %v2046_v37 = vpop.xlane.xlu1 %2045  ;;  %v2043_v20 = vpop.xlane.xlu0 %2042 }
 0x302   : > { %v2207_v62 = vsel %vm2206_vm5, %v2205_v36, %v2200_v29  ;;  %v2134_v57 = vadd.f32 %v2046_v37, %v1918_v53  ;;  %v2133_v8 = vadd.f32 %v2043_v20, %v1915_v10 }
 0x304   : > { %v2215_v55 = vrot.slane %v2134_v57, %v4237_v41  ;;  %v2211_v28 = vrot.slane %v2133_v8, %v4239_v52 }
 0x305   : > { %v2088_v16 = vpop.xlane.xlu1 %2087  ;;  %v2085_v11 = vpop.xlane.xlu0 %2084 }
 0x306   : > { %v2216_v35 = vsel %vm2206_vm5, %v2215_v55, %v2211_v28  ;;  %v2148_v25 = vadd.f32 %v2088_v16, %v1960_v38  ;;  %v2147_v3 = vadd.f32 %v2085_v11, %v1957_v21 }
 0x307   : > { %v2344_v23 = vsel %vm2343_vm6, %v2216_v35, %v2207_v62 }
 0x308   : > { %v2278_v61 = vrot.slane %v2148_v25, %v4237_v41  ;;  %v2274_v30 = vrot.slane %v2147_v3, %v4239_v52 }
 0x309   : > { %v2094_v50 = vpop.xlane.xlu1 %2093  ;;  %v2091_v4 = vpop.xlane.xlu0 %2090 }
 0x30a   : > { %v2279_v9 = vsel %vm2206_vm5, %v2278_v61, %v2274_v30  ;;  %v2150_v34 = vadd.f32 %v2094_v50, %v1966_v63  ;;  %v2149_v13 = vadd.f32 %v2091_v4, %v1963_v18 }
 0x30c   : > { %v2287_v47 = vrot.slane %v2150_v34, %v4237_v41  ;;  %v2283_v58 = vrot.slane %v2149_v13, %v4239_v52 }
 0x30d   : > { %v2052_v33 = vpop.xlane.xlu1 %2051  ;;  %v2049_v31 = vpop.xlane.xlu0 %2048 }
 0x30e   : > { %v2288_v12 = vsel %vm2206_vm5, %v2287_v47, %v2283_v58  ;;  %v2136_v32 = vadd.f32 %v2052_v33, %v1924_v46  ;;  %v2135_v43 = vadd.f32 %v2049_v31, %v1921_v39 }
 0x30f   : > { %v2357_v0 = vsel %vm2343_vm6, %v2288_v12, %v2279_v9 }
 0x310   : > { %v2224_v48 = vrot.slane %v2136_v32, %v4237_v41  ;;  %v2220_v42 = vrot.slane %v2135_v43, %v4239_v52 }
 0x311   : > { %v2100_v10 = vpop.xlane.xlu1 %2099  ;;  %v2097_v19 = vpop.xlane.xlu0 %2096 }
 0x312   : > { %v2225_v53 = vsel %vm2206_vm5, %v2224_v48, %v2220_v42  ;;  %v2152_v26 = vadd.f32 %v2100_v10, %v1972_v1  ;;  %v2151_v59 = vadd.f32 %v2097_v19, %v1969_v49 }
 0x313   : > { %v2346_v38 = vsel %vm2345_vm7, %v2225_v53, %v2344_v23 }
 0x314   : > { %v2296_v21 = vrot.slane %v2152_v26, %v4237_v41  ;;  %v2292_v44 = vrot.slane %v2151_v59, %v4239_v52 }
 0x315   : > { %v1978_v46 = vpop.xlane.xlu1 %1977  ;;  %v1975_v39 = vpop.xlane.xlu0 %1974 }
 0x316   : > { %v2297_v63 = vsel %vm2206_vm5, %v2296_v21, %v2292_v44 }
 0x317   : > { %v4261_v18 = vsel %vm2345_vm7, %v2297_v63, %v2357_v0 }
 0x319   : > { %v2058_v51 = vpop.xlane.xlu1 %2057  ;;  %v2055_v22 = vpop.xlane.xlu0 %2054 }
 0x31a   : > { %v2138_v54 = vadd.f32 %v2058_v51, %v4217_v6  ;;  %v2137_v7 = vadd.f32 %v2055_v22, %v4219_v60 }
 0x31c   : > { %v2233_v1 = vrot.slane %v2138_v54, %v4237_v41  ;;  %v2229_v49 = vrot.slane %v2137_v7, %v4239_v52 }
 0x31d   : > { %v2106_v15 = vpop.xlane.xlu1 %2105  ;;  %v2103_v45 = vpop.xlane.xlu0 %2102 }
 0x31e   : > { %v2234_v36 = vsel %vm2206_vm5, %v2233_v1, %v2229_v49  ;;  %v2154_v33 = vadd.f32 %v2106_v15, %v1978_v46  ;;  %v2153_v31 = vadd.f32 %v2103_v45, %v1975_v39 }
 0x31f   : > { %v2348_v29 = vsel %vm2347_vm8, %v2234_v36, %v2346_v38 }
 0x320   : > { %v2305_v53 = vrot.slane %v2154_v33, %v4237_v41  ;;  %v2301_v26 = vrot.slane %v2153_v31, %v4239_v52 }
 0x321   : > { %v1984_v37 = vpop.xlane.xlu1 %1983  ;;  %v1981_v20 = vpop.xlane.xlu0 %1980 }
 0x322   : > { %v2306_v15 = vsel %vm2206_vm5, %v2305_v53, %v2301_v26 }
 0x325   : > { %v2064_v62 = vpop.xlane.xlu1 %2063  ;;  %v2061_v57 = vpop.xlane.xlu0 %2060 }
 0x326   : > { %v2140_v30 = vadd.f32 %v2064_v62, %v4221_v14  ;;  %v2139_v50 = vadd.f32 %v2061_v57, %v4223_v24 }
 0x328   : > { %v2242_v12 = vrot.slane %v2140_v30, %v4237_v41  ;;  %v2238_v32 = vrot.slane %v2139_v50, %v4239_v52 }
 0x329   : > { %v2112_v8 = vpop.xlane.xlu1 %2111  ;;  %v2109_v55 = vpop.xlane.xlu0 %2108 }
 0x32a   : > { %v2156_v43 = vadd.f32 %v2112_v8, %v1984_v37  ;;  %v2155_v14 = vadd.f32 %v2109_v55, %v1981_v20  ;;  %v2243_v59 = vsel %vm2206_vm5, %v2242_v12, %v2238_v32 }
 0x32b   : > { %v2350_v45 = vsel %vm2349_vm9, %v2243_v59, %v2348_v29 }
 0x32c   : > { %v2314_v38 = vrot.slane %v2156_v43, %v4237_v41  ;;  %v2310_v21 = vrot.slane %v2155_v14, %v4239_v52 }
 0x32d   : > { %v1990_v6 = vpop.xlane.xlu1 %1989  ;;  %v1987_v28 = vpop.xlane.xlu0 %1986 }
 0x331   : > { %v2070_v60 = vpop.xlane.xlu1 %2069  ;;  %v2067_v16 = vpop.xlane.xlu0 %2066 }
 0x332   : > { %v2142_v34 = vadd.f32 %v2070_v60, %v4225_v5  ;;  %v2141_v13 = vadd.f32 %v2067_v16, %v4227_v2 }
 0x334   : > { %v2251_v5 = vrot.slane %v2142_v34, %v4237_v41  ;;  %v2247_v2 = vrot.slane %v2141_v13, %v4239_v52 }
 0x335   : > { %v2118_v11 = vpop.xlane.xlu1 %2117  ;;  %v2115_v35 = vpop.xlane.xlu0 %2114 }
 0x336   : > { %v2158_v0 = vadd.f32 %v2118_v11, %v1990_v6  ;;  %v2157_v24 = vadd.f32 %v2115_v35, %v1987_v28  ;;  %v2252_v51 = vsel %vm2206_vm5, %v2251_v5, %v2247_v2  ;;  %v2359_v28 = vsel %vm2347_vm8, %v2306_v15, %v4261_v18 }
 0x338   : > { %v2323_v44 = vrot.slane %v2158_v0, %v4237_v41  ;;  %v2319_v46 = vrot.slane %v2157_v24, %v4239_v52 }
 0x339   : > { %v1996_v25 = vpop.xlane.xlu1 %1995  ;;  %v1993_v3 = vpop.xlane.xlu0 %1992 }
 0x33a   : > { %v2324_v20 = vsel %vm2206_vm5, %v2323_v44, %v2319_v46 }
 0x33d   : > { %v2076_v23 = vpop.xlane.xlu1 %2075  ;;  %v2073_v61 = vpop.xlane.xlu0 %2072 }
 0x33e   : > { %v2144_v47 = vadd.f32 %v2076_v23, %v4229_v17  ;;  %v2143_v58 = vadd.f32 %v2073_v61, %v4231_v56 }
 0x340   : > { %v2260_v17 = vrot.slane %v2144_v47, %v4237_v41  ;;  %v2256_v56 = vrot.slane %v2143_v58, %v4239_v52 }
 0x341   : > { %v2124_v4 = vpop.xlane.xlu1 %2123  ;;  %v2121_v9 = vpop.xlane.xlu0 %2120 }
 0x342   : > { %v2160_v10 = vadd.f32 %v2124_v4, %v1996_v25  ;;  %v2159_v19 = vadd.f32 %v2121_v9, %v1993_v3  ;;  %v2261_v7 = vsel %vm2206_vm5, %v2260_v17, %v2256_v56 }
 0x344   : > { %v2332_v1 = vrot.slane %v2160_v10, %v4237_v41  ;;  %v2328_v49 = vrot.slane %v2159_v19, %v4239_v52 }
 0x345   : > { %v2002_v48 = vpop.xlane.xlu1 %2001  ;;  %v1999_v42 = vpop.xlane.xlu0 %1998 }
 0x346   : > { %v2333_v60 = vsel %vm2206_vm5, %v2332_v1, %v2328_v49 }
 0x349   : > { %v2082_v39 = vpop.xlane.xlu1 %2081  ;;  %v2079_v63 = vpop.xlane.xlu0 %2078 }
 0x34a   : > { %v2146_v22 = vadd.f32 %v2082_v39, %v4233_v40  ;;  %v2145_v54 = vadd.f32 %v2079_v63, %v4235_v27  ;;  %v2315_v40 = vsel %vm2206_vm5, %v2314_v38, %v2310_v21  ;;  %v2352_v27 = vsel %vm2351_vm10, %v2252_v51, %v2350_v45 }
 0x34b   : > { %v2354_v8 = vsel %vm2353_vm11, %v2261_v7, %v2352_v27  ;;  %v2360_v11 = vsel %vm2349_vm9, %v2315_v40, %v2359_v28 }
 0x34c   : > { %v2269_v36 = vrot.slane %v2146_v22, %v4237_v41  ;;  %v2265_v37 = vrot.slane %v2145_v54, %v4239_v52  ;;  %v2361_v3 = vsel %vm2351_vm10, %v2324_v20, %v2360_v11 }
 0x34d   : > { %v2130_v62 = vpop.xlane.xlu1 %2129  ;;  %v2127_v57 = vpop.xlane.xlu0 %2126  ;;  %v2362_v23 = vsel %vm2353_vm11, %v2333_v60, %v2361_v3 }
 0x34e   : > { %v2270_v55 = vsel %vm2206_vm5, %v2269_v36, %v2265_v37  ;;  %v2162_v29 = vadd.f32 %v2130_v62, %v2002_v48  ;;  %v2161_v6 = vadd.f32 %v2127_v57, %v1999_v42 }
 0x34f   : > { %v2356_v16 = vsel %vm2355_vm12, %v2270_v55, %v2354_v8 }
 0x350   : > { %2367 = vst.msk [vmem:[%s3175_s23] sm:$0xff] %vm2366_vm13, %v2356_v16  ;;  %v2341_v35 = vrot.slane %v2162_v29, %v4237_v41  ;;  %v2337_v25 = vrot.slane %v2161_v6, %v4239_v52 }
 0x352   : > { %v2342_v61 = vsel %vm2206_vm5, %v2341_v35, %v2337_v25 }
 0x353   : > { %v2363_v18 = vsel %vm2355_vm12, %v2342_v61, %v2362_v23 }
 0x354   : > { %2368 = vst.msk [vmem:[%s3175_s23 + $0x8] sm:$0xff] %vm2366_vm13, %v2363_v18 }
 0x355 PF: > { %s2548_s15 = sshll.u32 %s3043_s16, 8  ;;  %s2383_s8 = sshll.u32 %s3175_s23, 4  ;;  %s4325_s8 = int_to_ptr.vmem [resolvable:$true] %s2383_s8 }
 0x356   : > { %s4322_s7 = scalar_lea.hbm %s4384_s3, %s2548_s15  ;;  %s4399_s9 = sand.u32 1, %s3031_s13  }
 0x357   : > { %s4329_s10 = scalar_lea.sflag [#allocation4], %s4399_s9  ;;  %s2961_s11 = scalar_lea.vmem %s4325_s8, 256 }
 0x358   : > { %p2962_p4 = scmp.ne.s32.totalorder %s4325_s8, %s2961_s11  ;;  %s3059_s16 = smov [#allocation3]  }
 0x359   : > { %s2965_s20 = sshll.u32 %s3059_s16, 4  ;;  %s2966_s20 = int_to_ptr.vmem [resolvable:$false] %s2965_s20 }
 0x35a   : > { %p2963_p5 = pnand %p2962_p4, %p3131_p3  ;;  %s2967_s21 = scalar_lea.vmem %s2966_s20, 512 }
 0x35b   : > { %p2968_p7 = scmp.lt.s32.totalorder %s4325_s8, %s2966_s20  ;;  %p2969_p8 = scmp.lt.s32.totalorder %s2967_s21, %s2961_s11 }
 0x35c   : > { %p2964_p6 = pneg %p2963_p5 }
 0x35d   : > { %p2970_p10 = por %p2969_p8, %p2968_p7 }
 0x35f   : > { %p2971_p11 = pnand %p2970_p10, %p2964_p6 }
 0x361   : > { %2974 = shalt.err (!%p2971_p11)
}
 0x362   : > { %s2975_s23 = scalar_lea.hbm %s4322_s7, 256  ;;  %s2979_s30 = scalar_lea.hbm %s4384_s3, 512 }
 0x363   : > { %p2976_p12 = scmp.ne.s32.totalorder %s4322_s7, %s2975_s23  ;;  %p2980_p1 = scmp.lt.u32.totalorder %s4322_s7, %s4384_s3 }
 0x364   : > { %p2981_p2 = scmp.lt.u32.totalorder %s2979_s30, %s2975_s23  ;;  %p2983_p5 = scmp.lt.u32.totalorder %s2975_s23, %s4322_s7 }
 0x365   : > { %p2977_p13 = pnand %p2976_p12, %p3131_p3 }
 0x366   : > { %p2982_p4 = por %p2981_p2, %p2980_p1 }
 0x367   : > { %p2978_p0 = pneg %p2977_p13 }
 0x368   : > { %p2984_p6 = por %p2983_p5, %p2982_p4 }
 0x36a   : > { %p2985_p7 = pnand %p2984_p6, %p2978_p0 }
 0x36c   : > { %2988 = shalt.err (!%p2985_p7)
}
 0x36d   : > { %s3060_s15 = smov 128   ;;  %s3061_s5 = smov 8  }
 0x36e   : > { %2850 = dma.vmem_to_hbm [thread:$0]  (%p3131_p3), %s4325_s8, 256, %s4322_s7, %s4329_s10, %s3060_s15, %s3060_s15, %s3061_s5  }
 0x36f PF: > { %p2856_p8 = scmp.ge.s32.totalorder %s3055_s19, 2  ;;  %s2398_s6 = sand.u32 1, %s3027_s12  }
 0x370   : > { %s2399_s9 = scalar_lea.sflag [#allocation4], %s2398_s6 }
 0x371   : > { %p2853_p10 = pnand %p2856_p8, %p3141_p9 }
 0x373   : > { %3022 = dma.done.wait (!%p2853_p10), %s2399_s9, 256  }
 0x374   : > { %3024 = vsyncadd (!%p2853_p10), %s2399_s9, 4294967040  ;;  %s16_s19 = sadd.s32 1, %s3055_s19   ;;  %s4400_s24 = sld [smem:[#allocation6_spill]] }
 0x375   : > { %p13_p11 = scmp.ge.s32.totalorder %s16_s19, 42   ;;  %s4401_s12 = smov %s3031_s13 }
 0x376   : > { %s4402_s13 = smov %s3035_s14  ;;  %s4403_s14 = smov %s3149_s28 }
 0x377   : > { %s4404_s15 = smov %s3047_s17  ;;  %s4405_s16 = smov %s3051_s18 }
 0x378   : > { %s4406_s17 = smov %s4409_s22  ;;  %15 = sbr.rel (!%p13_p11) target bundleno = 5 (0x5), region = 87 }
 0x37a   : > { %s4407_s18 = smov %s4400_s24 }
 0x37f   :  { %2404 = vsyncpa [#allocation4], 1 }
 0x380   :  { %2406 = vsyncpa [#allocation4 + $0x1], 1 }

</bundles_post_ra>
